<compile_context>
chip_gen: v6e
topology: v6e:2x2x1
jax: 0.10.0
libtpu: 0.0.40
codegen_flags: <defaults>
</compile_context>

<pallas_src>
import functools
import math

import jax
import jax.numpy as jnp
import numpy as np
from jax.experimental import pallas as pl
from jax.experimental.pallas import tpu as pltpu

_HP = jax.lax.Precision.HIGHEST  # only used by the pure-JAX reference
_LOG2E = 1.4426950408889634


# ------------------------- in-kernel math helpers -------------------------

def _layernorm(x, w, b, eps=1e-5):
    mu = jnp.mean(x, axis=-1, keepdims=True)
    xc = x - mu
    var = jnp.mean(xc * xc, axis=-1, keepdims=True)
    return xc * jax.lax.rsqrt(var + eps) * w + b


def _gelu_tanh(x):
    # tanh-form GELU (single EUP tanh); max abs deviation from the exact erf
    # GELU is ~5e-4, far inside the validation tolerance.
    c = math.sqrt(2.0 / math.pi)
    return 0.5 * x * (1.0 + jnp.tanh(c * (x + 0.044715 * (x * x * x))))


# ------------------------------ Pallas kernel ------------------------------

def attention_block_kernel(x_ref, ln1w_ref, ln1b_ref,
                           wq_ref, wk_ref, wv_ref, wproj_ref, bproj_ref,
                           ln2w_ref, ln2b_ref, w1_ref, b1_ref, w2_ref, b2_ref,
                           o_ref, kcache_ref, vcache_ref,
                           *, num_heads, tq):
    f32 = jnp.float32
    bf16 = jnp.bfloat16
    H = num_heads
    N = x_ref.shape[1]
    C = x_ref.shape[2]
    hd = C // H

    ln1w = ln1w_ref[...]
    ln1b = ln1b_ref[...]

    # ---- K/V cache: computed once per batch row (t == 0), reused across the
    # query tiles of that row (t axis is "arbitrary" when n_tq > 1, so this
    # scratch residency is valid).
    @pl.when(pl.program_id(1) == 0)
    def _():
        xn_full = _layernorm(x_ref[0], ln1w, ln1b).astype(bf16)        # (N, C)
        k_full = jnp.dot(xn_full, wk_ref[...],
                         preferred_element_type=f32).astype(bf16)      # (N, C)
        v_full = jnp.dot(xn_full, wv_ref[...],
                         preferred_element_type=f32).astype(bf16)      # (N, C)
        # Head-major relayout done once per row (XLU), not once per tile.
        kcache_ref[...] = k_full.reshape(N, H, hd).transpose(1, 0, 2)  # (H,N,hd)
        vcache_ref[...] = v_full.reshape(N, H, hd).transpose(1, 0, 2)  # (H,N,hd)

    # ---- query tile (sliced from the resident full-sequence block) ----------
    t = pl.program_id(1)
    start = pl.multiple_of(t * tq, tq)
    xq = x_ref[0, pl.ds(start, tq), :]                                 # (TQ, C) f32
    xnq = _layernorm(xq, ln1w, ln1b).astype(bf16)

    # Full-width Q projection (scale * log2(e) folded into wq), then head split.
    q_full = jnp.dot(xnq, wq_ref[...], preferred_element_type=f32)     # (TQ, C)
    q = q_full.astype(bf16).reshape(tq, H, hd).transpose(1, 0, 2)      # (H,TQ,hd)

    # Attention core (scores already in log2 space thanks to the folded scale).
    s = jnp.einsum("hqd,hkd->hqk", q, kcache_ref[...],
                   preferred_element_type=f32)                         # (H,TQ,N)
    s = s - jnp.max(s, axis=-1, keepdims=True)
    p = jnp.exp2(s)
    p = p * pl.reciprocal(jnp.sum(p, axis=-1, keepdims=True), approx=True)
    o = jnp.einsum("hqk,hkd->hqd", p.astype(bf16), vcache_ref[...],
                   preferred_element_type=f32)                         # (H,TQ,hd)

    # Head concat (cheap relayout) + single full-width output projection.
    o_cat = o.transpose(1, 0, 2).reshape(tq, C).astype(bf16)           # (TQ, C)
    attn_out = jnp.dot(o_cat, wproj_ref[...],
                       preferred_element_type=f32) + bproj_ref[...]
    x1 = xq + attn_out                                                 # residual 1

    # ---------------- MLP branch: x1 + fc2(gelu(fc1(norm2(x1)))) -------------
    xn2 = _layernorm(x1, ln2w_ref[...], ln2b_ref[...]).astype(bf16)
    h1 = jnp.dot(xn2, w1_ref[...], preferred_element_type=f32) + b1_ref[...]
    h1 = _gelu_tanh(h1).astype(bf16)
    y = jnp.dot(h1, w2_ref[...], preferred_element_type=f32) + b2_ref[...]

    o_ref[0] = (x1 + y).astype(o_ref.dtype)                            # residual 2


# ------------------------------- wrapper -----------------------------------

def _gen_limits():
    """(vmem_limit_bytes, max query tile) picked per TPU generation.

    64-MiB-per-TensorCore parts (v7x-class): leave headroom, cap TQ at 128.
    128-MiB parts (v5e/v6e): large limit, allow TQ up to 512.
    """
    phys = 128 * 1024 * 1024
    try:
        info = pltpu.get_tpu_info()
        phys = int(getattr(info, "vmem_capacity_bytes", phys))
    except Exception:
        pass
    if phys <= 64 * 1024 * 1024:
        return 52 * 1024 * 1024, 128
    return 100 * 1024 * 1024, 512


def _pick_tq(n, cap):
    """Largest preferred query tile <= cap that divides N (big tiles amortize
    the ~0.35us/step overhead; 512 is now reachable on v5e/v6e)."""
    for tqc in (512, 256, 128, 64, 32, 16, 8):
        if tqc <= cap and tqc <= n and n % tqc == 0:
            return tqc
    return n  # e.g. N = 197 (ViT + cls token): full-sequence tile


def attention_block(x, params, *, num_heads):
    B, N, C = x.shape
    H = num_heads
    hd = C // H
    scale = hd ** (-0.5)
    Hm = params["w1"].shape[1]

    vmem_limit, tq_cap = _gen_limits()
    TQ = _pick_tq(N, tq_cap)
    n_tq = N // TQ

    bf16 = jnp.bfloat16
    w_qkv = params["w_qkv"]                       # (C, 3C), cols = [q | k | v]
    # Full-width (C, C) projection weights; qk scale AND log2(e) folded into wq
    # so the kernel's softmax uses exp2 directly.
    wq = (w_qkv[:, 0 * C:1 * C] * (scale * _LOG2E)).astype(bf16)
    wk = w_qkv[:, 1 * C:2 * C].astype(bf16)
    wv = w_qkv[:, 2 * C:3 * C].astype(bf16)
    wproj = params["w_proj"].astype(bf16)
    w1 = params["w1"].astype(bf16)
    w2 = params["w2"].astype(bf16)

    kernel = functools.partial(attention_block_kernel, num_heads=H, tq=TQ)

    def const_spec(shape):
        # Constant blocks (index never changes): single-buffer to halve their
        # resident VMEM. Fall back gracefully if pipeline_mode is unsupported.
        idx = lambda b, t, _n=len(shape): (0,) * _n
        try:
            return pl.BlockSpec(shape, idx, pipeline_mode=pl.Buffered(1))
        except TypeError:
            return pl.BlockSpec(shape, idx)

    in_specs = [
        pl.BlockSpec((1, N, C), lambda b, t: (b, 0, 0)),    # x (full row; DMA'd once per b)
        const_spec((1, C)), const_spec((1, C)),             # ln1 w, b
        const_spec((C, C)),                                 # wq (scale*log2e folded)
        const_spec((C, C)),                                 # wk
        const_spec((C, C)),                                 # wv
        const_spec((C, C)), const_spec((1, C)),             # proj w, b
        const_spec((1, C)), const_spec((1, C)),             # ln2 w, b
        const_spec((C, Hm)), const_spec((1, Hm)),           # fc1 w, b
        const_spec((Hm, C)), const_spec((1, C)),            # fc2 w, b
    ]

    # K/V caching across query tiles requires the t axis to be non-parallel
    # whenever it is non-trivial.
    t_sem = "parallel" if n_tq == 1 else "arbitrary"

    # Advisory cost estimate: K/V projections counted once per batch row
    # (cached); x block DMA'd once per row, written once per tile.
    flops = (B * (2 * 2 * N * C * C)                      # k, v projections
             + B * n_tq * (2 * TQ * C * C                 # q projection
                           + 2 * 2 * TQ * N * C           # QK^T + PV
                           + 2 * TQ * C * C               # output projection
                           + 2 * 2 * TQ * C * Hm))        # fc1 + fc2
    transcendentals = B * n_tq * (H * TQ * N + TQ * Hm)
    weight_bytes = 2 * (4 * C * C + 2 * C * Hm) + 4 * (6 * C + Hm)
    bytes_accessed = 2 * B * N * C * x.dtype.itemsize + weight_bytes
    cost = pl.CostEstimate(flops=flops, transcendentals=transcendentals,
                           bytes_accessed=bytes_accessed)

    return pl.pallas_call(
        kernel,
        out_shape=jax.ShapeDtypeStruct((B, N, C), x.dtype),
        grid_spec=pltpu.PrefetchScalarGridSpec(
            num_scalar_prefetch=0,
            grid=(B, n_tq),
            in_specs=in_specs,
            out_specs=pl.BlockSpec((1, TQ, C), lambda b, t: (b, t, 0)),
            scratch_shapes=[pltpu.VMEM((H, N, hd), bf16),   # K cache (head-major)
                            pltpu.VMEM((H, N, hd), bf16)],  # V cache (head-major)
        ),
        compiler_params=pltpu.CompilerParams(
            dimension_semantics=("parallel", t_sem),
            vmem_limit_bytes=vmem_limit),
        cost_estimate=cost,
    )(x, params["ln1_w"], params["ln1_b"],
      wq, wk, wv, wproj, params["b_proj"],
      params["ln2_w"], params["ln2_b"],
      w1, params["b1"], w2, params["b2"])


# ------------------------- pure-JAX reference -------------------------------

def attention_block_reference(x, params, *, num_heads):
    B, N, C = x.shape
    hd = C // num_heads
    scale = hd ** (-0.5)

    def ln(z, w, b):
        mu = z.mean(-1, keepdims=True)
        var = ((z - mu) ** 2).mean(-1, keepdims=True)
        return (z - mu) / jnp.sqrt(var + 1e-5) * w + b

    xn = ln(x, params["ln1_w"][0], params["ln1_b"][0])
    qkv = jnp.einsum("bnc,cd->bnd", xn, params["w_qkv"], precision=_HP)
    qkv = qkv.reshape(B, N, 3, num_heads, hd).transpose(2, 0, 3, 1, 4)
    q, k, v = qkv[0], qkv[1], qkv[2]
    attn = jnp.einsum("bhnd,bhmd->bhnm", q * scale, k, precision=_HP)
    attn = jax.nn.softmax(attn, axis=-1)
    out = jnp.einsum("bhnm,bhmd->bhnd", attn, v, precision=_HP)
    out = out.transpose(0, 2, 1, 3).reshape(B, N, C)
    out = jnp.einsum("bnc,cd->bnd", out, params["w_proj"], precision=_HP)
    out = out + params["b_proj"][0]
    x1 = x + out
    xn2 = ln(x1, params["ln2_w"][0], params["ln2_b"][0])
    h = jnp.einsum("bnc,ch->bnh", xn2, params["w1"], precision=_HP)
    h = jax.nn.gelu(h + params["b1"][0], approximate=False)
    y = jnp.einsum("bnh,hc->bnc", h, params["w2"], precision=_HP)
    y = y + params["b2"][0]
    return x1 + y


# --------------------------------- main -------------------------------------

if __name__ == "__main__":
    B, N, C = 2, 8, 32
    num_heads = 4
    mlp_ratio = 4.0
    Hm = int(C * mlp_ratio)

    key = jax.random.PRNGKey(0)
    keys = jax.random.split(key, 8)

    # Deterministic synthetic parameters (LayerNorm matches PyTorch default
    # init: weight=1, bias=0; linear weights are small random normals).
    params = {
        "ln1_w": jnp.ones((1, C), jnp.float32),
        "ln1_b": jnp.zeros((1, C), jnp.float32),
        "w_qkv": 0.05 * jax.random.normal(keys[0], (C, 3 * C), jnp.float32),
        "w_proj": 0.05 * jax.random.normal(keys[1], (C, C), jnp.float32),
        "b_proj": 0.01 * jax.random.normal(keys[2], (1, C), jnp.float32),
        "ln2_w": jnp.ones((1, C), jnp.float32),
        "ln2_b": jnp.zeros((1, C), jnp.float32),
        "w1": 0.05 * jax.random.normal(keys[3], (C, Hm), jnp.float32),
        "b1": 0.01 * jax.random.normal(keys[4], (1, Hm), jnp.float32),
        "w2": 0.05 * jax.random.normal(keys[5], (Hm, C), jnp.float32),
        "b2": 0.01 * jax.random.normal(keys[6], (1, C), jnp.float32),
    }

    x = jax.random.normal(keys[7], (B, N, C), jnp.float32)

    out = attention_block(x, params, num_heads=num_heads)
    out = jax.block_until_ready(out)

    ref = jax.block_until_ready(
        attention_block_reference(x, params, num_heads=num_heads))

    # bf16 MXU matmuls (f32 accumulation) + tanh GELU + approx reciprocal +
    # exp2 softmax: validate against the exact f32 reference with a
    # bf16-appropriate tolerance.
    np.testing.assert_allclose(np.asarray(out), np.asarray(ref),
                               atol=2e-2, rtol=2e-2)
    print("KERNEL_OK")
</pallas_src>

<mosaic_0001>
module attributes {stable_mosaic.version = 11 : i64} {
  func.func @attention_block_kernel(%arg0: i32, %arg1: i32, %arg2: memref<1x8x32xf32, #tpu.memory_space<vmem>>, %arg3: memref<1x32xf32, #tpu.memory_space<vmem>>, %arg4: memref<1x32xf32, #tpu.memory_space<vmem>>, %arg5: memref<32x32xbf16, #tpu.memory_space<vmem>>, %arg6: memref<32x32xbf16, #tpu.memory_space<vmem>>, %arg7: memref<32x32xbf16, #tpu.memory_space<vmem>>, %arg8: memref<32x32xbf16, #tpu.memory_space<vmem>>, %arg9: memref<1x32xf32, #tpu.memory_space<vmem>>, %arg10: memref<1x32xf32, #tpu.memory_space<vmem>>, %arg11: memref<1x32xf32, #tpu.memory_space<vmem>>, %arg12: memref<32x128xbf16, #tpu.memory_space<vmem>>, %arg13: memref<1x128xf32, #tpu.memory_space<vmem>>, %arg14: memref<128x32xbf16, #tpu.memory_space<vmem>>, %arg15: memref<1x32xf32, #tpu.memory_space<vmem>>, %arg16: memref<1x8x32xf32, #tpu.memory_space<vmem>>, %arg17: memref<4x8x8xbf16, #tpu.memory_space<vmem>>, %arg18: memref<4x8x8xbf16, #tpu.memory_space<vmem>>) attributes {dimension_semantics = [#tpu.dimension_semantics<parallel>, #tpu.dimension_semantics<parallel>], iteration_bounds = array<i64: 2, 1>, scalar_prefetch = 0 : i64, scratch_operands = 2 : i64, tpu.core_type = #tpu.core_type<tc>, window_params = [{transform_indices = @transform_0, window_bounds = array<i64: 1, 8, 32>}, {pipeline_mode = #tpu.pipeline_mode<synchronous>, transform_indices = @transform_1, window_bounds = array<i64: 1, 32>}, {pipeline_mode = #tpu.pipeline_mode<synchronous>, transform_indices = @transform_2, window_bounds = array<i64: 1, 32>}, {pipeline_mode = #tpu.pipeline_mode<synchronous>, transform_indices = @transform_3, window_bounds = array<i64: 32, 32>}, {pipeline_mode = #tpu.pipeline_mode<synchronous>, transform_indices = @transform_4, window_bounds = array<i64: 32, 32>}, {pipeline_mode = #tpu.pipeline_mode<synchronous>, transform_indices = @transform_5, window_bounds = array<i64: 32, 32>}, {pipeline_mode = #tpu.pipeline_mode<synchronous>, transform_indices = @transform_6, window_bounds = array<i64: 32, 32>}, {pipeline_mode = #tpu.pipeline_mode<synchronous>, transform_indices = @transform_7, window_bounds = array<i64: 1, 32>}, {pipeline_mode = #tpu.pipeline_mode<synchronous>, transform_indices = @transform_8, window_bounds = array<i64: 1, 32>}, {pipeline_mode = #tpu.pipeline_mode<synchronous>, transform_indices = @transform_9, window_bounds = array<i64: 1, 32>}, {pipeline_mode = #tpu.pipeline_mode<synchronous>, transform_indices = @transform_10, window_bounds = array<i64: 32, 128>}, {pipeline_mode = #tpu.pipeline_mode<synchronous>, transform_indices = @transform_11, window_bounds = array<i64: 1, 128>}, {pipeline_mode = #tpu.pipeline_mode<synchronous>, transform_indices = @transform_12, window_bounds = array<i64: 128, 32>}, {pipeline_mode = #tpu.pipeline_mode<synchronous>, transform_indices = @transform_13, window_bounds = array<i64: 1, 32>}, {transform_indices = @transform_14, window_bounds = array<i64: 1, 8, 32>}]} {
    %c0 = arith.constant 0 : index
    %c0_0 = arith.constant 0 : index
    %0 = vector.load %arg3[%c0, %c0_0] : memref<1x32xf32, #tpu.memory_space<vmem>>, vector<1x32xf32>
    %c0_1 = arith.constant 0 : index
    %c0_2 = arith.constant 0 : index
    %1 = vector.load %arg4[%c0_1, %c0_2] : memref<1x32xf32, #tpu.memory_space<vmem>>, vector<1x32xf32>
    %c0_i32 = arith.constant 0 : i32
    %2 = arith.cmpi eq, %arg1, %c0_i32 : i32
    %3 = arith.extui %2 : i1 to i32
    %c0_i32_3 = arith.constant 0 : i32
    %4 = arith.cmpi ne, %3, %c0_i32_3 : i32
    scf.if %4 {
      %c0_54 = arith.constant 0 : index
      %c0_55 = arith.constant 0 : index
      %c0_56 = arith.constant 0 : index
      %111 = vector.load %arg2[%c0_54, %c0_55, %c0_56] : memref<1x8x32xf32, #tpu.memory_space<vmem>>, vector<1x8x32xf32>
      %112 = vector.shape_cast %111 : vector<1x8x32xf32> to vector<8x32xf32>
      %cst_57 = arith.constant dense<0.000000e+00> : vector<8xf32>
      %113 = vector.multi_reduction <add>, %112, %cst_57 [1] : vector<8x32xf32> to vector<8xf32>
      %114 = vector.shape_cast %113 : vector<8xf32> to vector<8x1xf32>
      %cst_58 = arith.constant 3.200000e+01 : f32
      %115 = vector.broadcast %cst_58 : f32 to vector<8x1xf32>
      %116 = arith.divf %114, %115 : vector<8x1xf32>
      %117 = vector.broadcast %116 : vector<8x1xf32> to vector<8x32xf32>
      %118 = arith.subf %112, %117 : vector<8x32xf32>
      %119 = arith.mulf %118, %118 : vector<8x32xf32>
      %cst_59 = arith.constant dense<0.000000e+00> : vector<8xf32>
      %120 = vector.multi_reduction <add>, %119, %cst_59 [1] : vector<8x32xf32> to vector<8xf32>
      %121 = vector.shape_cast %120 : vector<8xf32> to vector<8x1xf32>
      %cst_60 = arith.constant 3.200000e+01 : f32
      %122 = vector.broadcast %cst_60 : f32 to vector<8x1xf32>
      %123 = arith.divf %121, %122 : vector<8x1xf32>
      %cst_61 = arith.constant 9.99999974E-6 : f32
      %124 = vector.broadcast %cst_61 : f32 to vector<8x1xf32>
      %125 = arith.addf %123, %124 : vector<8x1xf32>
      %126 = math.rsqrt %125 : vector<8x1xf32>
      %127 = vector.broadcast %126 : vector<8x1xf32> to vector<8x32xf32>
      %128 = arith.mulf %118, %127 : vector<8x32xf32>
      %129 = vector.broadcast %0 : vector<1x32xf32> to vector<8x32xf32>
      %130 = arith.mulf %128, %129 : vector<8x32xf32>
      %131 = vector.broadcast %1 : vector<1x32xf32> to vector<8x32xf32>
      %132 = arith.addf %130, %131 : vector<8x32xf32>
      %133 = arith.truncf %132 : vector<8x32xf32> to vector<8x32xbf16>
      %c0_62 = arith.constant 0 : index
      %c0_63 = arith.constant 0 : index
      %134 = vector.load %arg6[%c0_62, %c0_63] : memref<32x32xbf16, #tpu.memory_space<vmem>>, vector<32x32xbf16>
      %cst_64 = arith.constant dense<0.000000e+00> : vector<8x32xf32>
      %135 = tpu.matmul %133, %134, %cst_64 {dimension_numbers = #tpu.dot_dimension_numbers<[1], [0], [0], [1], [0, 0, 1, 1], [], []>} : vector<8x32xbf16>, vector<32x32xbf16>, vector<8x32xf32> -> vector<8x32xf32>
      %136 = arith.truncf %135 : vector<8x32xf32> to vector<8x32xbf16>
      %c0_65 = arith.constant 0 : index
      %c0_66 = arith.constant 0 : index
      %137 = vector.load %arg7[%c0_65, %c0_66] : memref<32x32xbf16, #tpu.memory_space<vmem>>, vector<32x32xbf16>
      %cst_67 = arith.constant dense<0.000000e+00> : vector<8x32xf32>
      %138 = tpu.matmul %133, %137, %cst_67 {dimension_numbers = #tpu.dot_dimension_numbers<[1], [0], [0], [1], [0, 0, 1, 1], [], []>} : vector<8x32xbf16>, vector<32x32xbf16>, vector<8x32xf32> -> vector<8x32xf32>
      %139 = arith.truncf %138 : vector<8x32xf32> to vector<8x32xbf16>
      %140 = vector.shape_cast %136 : vector<8x32xbf16> to vector<8x4x8xbf16>
      %141 = tpu.transpose %140, [1, 0, 2] : vector<8x4x8xbf16> -> vector<4x8x8xbf16>
      %c0_68 = arith.constant 0 : index
      %c0_69 = arith.constant 0 : index
      %c0_70 = arith.constant 0 : index
      %142 = vector.load %arg17[%c0_68, %c0_69, %c0_70] : memref<4x8x8xbf16, #tpu.memory_space<vmem>>, vector<4x8x8xbf16>
      tpu.vector_store %arg17[%c0_68, %c0_69, %c0_70], %141 {strides = array<i32>} : memref<4x8x8xbf16, #tpu.memory_space<vmem>>, vector<4x8x8xbf16>,
      %143 = vector.shape_cast %139 : vector<8x32xbf16> to vector<8x4x8xbf16>
      %144 = tpu.transpose %143, [1, 0, 2] : vector<8x4x8xbf16> -> vector<4x8x8xbf16>
      %c0_71 = arith.constant 0 : index
      %c0_72 = arith.constant 0 : index
      %c0_73 = arith.constant 0 : index
      %145 = vector.load %arg18[%c0_71, %c0_72, %c0_73] : memref<4x8x8xbf16, #tpu.memory_space<vmem>>, vector<4x8x8xbf16>
      tpu.vector_store %arg18[%c0_71, %c0_72, %c0_73], %144 {strides = array<i32>} : memref<4x8x8xbf16, #tpu.memory_space<vmem>>, vector<4x8x8xbf16>,
    } else {
    }
    %c8_i32 = arith.constant 8 : i32
    %5 = arith.muli %arg1, %c8_i32 : i32
    %6 = tpu.assume_multiple %5, 8 : i32
    %c0_4 = arith.constant 0 : index
    %7 = arith.index_cast %6 : i32 to index
    %c0_5 = arith.constant 0 : index
    %8 = vector.load %arg2[%c0_4, %7, %c0_5] : memref<1x8x32xf32, #tpu.memory_space<vmem>>, vector<1x8x32xf32>
    %9 = vector.shape_cast %8 : vector<1x8x32xf32> to vector<8x32xf32>
    %cst = arith.constant dense<0.000000e+00> : vector<8xf32>
    %10 = vector.multi_reduction <add>, %9, %cst [1] : vector<8x32xf32> to vector<8xf32>
    %11 = vector.shape_cast %10 : vector<8xf32> to vector<8x1xf32>
    %cst_6 = arith.constant 3.200000e+01 : f32
    %12 = vector.broadcast %cst_6 : f32 to vector<8x1xf32>
    %13 = arith.divf %11, %12 : vector<8x1xf32>
    %14 = vector.broadcast %13 : vector<8x1xf32> to vector<8x32xf32>
    %15 = arith.subf %9, %14 : vector<8x32xf32>
    %16 = arith.mulf %15, %15 : vector<8x32xf32>
    %cst_7 = arith.constant dense<0.000000e+00> : vector<8xf32>
    %17 = vector.multi_reduction <add>, %16, %cst_7 [1] : vector<8x32xf32> to vector<8xf32>
    %18 = vector.shape_cast %17 : vector<8xf32> to vector<8x1xf32>
    %cst_8 = arith.constant 3.200000e+01 : f32
    %19 = vector.broadcast %cst_8 : f32 to vector<8x1xf32>
    %20 = arith.divf %18, %19 : vector<8x1xf32>
    %cst_9 = arith.constant 9.99999974E-6 : f32
    %21 = vector.broadcast %cst_9 : f32 to vector<8x1xf32>
    %22 = arith.addf %20, %21 : vector<8x1xf32>
    %23 = math.rsqrt %22 : vector<8x1xf32>
    %24 = vector.broadcast %23 : vector<8x1xf32> to vector<8x32xf32>
    %25 = arith.mulf %15, %24 : vector<8x32xf32>
    %26 = vector.broadcast %0 : vector<1x32xf32> to vector<8x32xf32>
    %27 = arith.mulf %25, %26 : vector<8x32xf32>
    %28 = vector.broadcast %1 : vector<1x32xf32> to vector<8x32xf32>
    %29 = arith.addf %27, %28 : vector<8x32xf32>
    %30 = arith.truncf %29 : vector<8x32xf32> to vector<8x32xbf16>
    %c0_10 = arith.constant 0 : index
    %c0_11 = arith.constant 0 : index
    %31 = vector.load %arg5[%c0_10, %c0_11] : memref<32x32xbf16, #tpu.memory_space<vmem>>, vector<32x32xbf16>
    %cst_12 = arith.constant dense<0.000000e+00> : vector<8x32xf32>
    %32 = tpu.matmul %30, %31, %cst_12 {dimension_numbers = #tpu.dot_dimension_numbers<[1], [0], [0], [1], [0, 0, 1, 1], [], []>} : vector<8x32xbf16>, vector<32x32xbf16>, vector<8x32xf32> -> vector<8x32xf32>
    %33 = arith.truncf %32 : vector<8x32xf32> to vector<8x32xbf16>
    %34 = vector.shape_cast %33 : vector<8x32xbf16> to vector<8x4x8xbf16>
    %35 = tpu.transpose %34, [1, 0, 2] : vector<8x4x8xbf16> -> vector<4x8x8xbf16>
    %c0_13 = arith.constant 0 : index
    %c0_14 = arith.constant 0 : index
    %c0_15 = arith.constant 0 : index
    %36 = vector.load %arg17[%c0_13, %c0_14, %c0_15] : memref<4x8x8xbf16, #tpu.memory_space<vmem>>, vector<4x8x8xbf16>
    "tpu.trace_start"() <{level = 10 : i32, message = "hqd,hkd->hqk"}> : () -> ()
    %cst_16 = arith.constant dense<0.000000e+00> : vector<4x8x8xf32>
    %37 = tpu.matmul %35, %36, %cst_16 {dimension_numbers = #tpu.dot_dimension_numbers<[2], [2], [1], [1], [0, 0, 0, 1, 1, 1], [0], [0]>} : vector<4x8x8xbf16>, vector<4x8x8xbf16>, vector<4x8x8xf32> -> vector<4x8x8xf32>
    "tpu.trace_stop"() : () -> ()
    %cst_17 = arith.constant dense<0xFF800000> : vector<4x8xf32>
    %38 = vector.multi_reduction <maximumf>, %37, %cst_17 [2] : vector<4x8x8xf32> to vector<4x8xf32>
    %39 = vector.shape_cast %38 : vector<4x8xf32> to vector<4x8x1xf32>
    %40 = vector.broadcast %39 : vector<4x8x1xf32> to vector<4x8x8xf32>
    %41 = arith.subf %37, %40 : vector<4x8x8xf32>
    %42 = math.exp2 %41 : vector<4x8x8xf32>
    %cst_18 = arith.constant dense<0.000000e+00> : vector<4x8xf32>
    %43 = vector.multi_reduction <add>, %42, %cst_18 [2] : vector<4x8x8xf32> to vector<4x8xf32>
    %44 = vector.shape_cast %43 : vector<4x8xf32> to vector<4x8x1xf32>
    %45 = tpu.reciprocal %44 {approx = true} : vector<4x8x1xf32> -> vector<4x8x1xf32>
    %46 = vector.broadcast %45 : vector<4x8x1xf32> to vector<4x8x8xf32>
    %47 = arith.mulf %42, %46 : vector<4x8x8xf32>
    %48 = arith.truncf %47 : vector<4x8x8xf32> to vector<4x8x8xbf16>
    %c0_19 = arith.constant 0 : index
    %c0_20 = arith.constant 0 : index
    %c0_21 = arith.constant 0 : index
    %49 = vector.load %arg18[%c0_19, %c0_20, %c0_21] : memref<4x8x8xbf16, #tpu.memory_space<vmem>>, vector<4x8x8xbf16>
    "tpu.trace_start"() <{level = 10 : i32, message = "hqk,hkd->hqd"}> : () -> ()
    %cst_22 = arith.constant dense<0.000000e+00> : vector<4x8x8xf32>
    %50 = tpu.matmul %48, %49, %cst_22 {dimension_numbers = #tpu.dot_dimension_numbers<[2], [1], [1], [2], [0, 0, 0, 1, 1, 2], [0], [0]>} : vector<4x8x8xbf16>, vector<4x8x8xbf16>, vector<4x8x8xf32> -> vector<4x8x8xf32>
    "tpu.trace_stop"() : () -> ()
    %51 = tpu.transpose %50, [1, 0, 2] : vector<4x8x8xf32> -> vector<8x4x8xf32>
    %52 = vector.shape_cast %51 : vector<8x4x8xf32> to vector<8x32xf32>
    %53 = arith.truncf %52 : vector<8x32xf32> to vector<8x32xbf16>
    %c0_23 = arith.constant 0 : index
    %c0_24 = arith.constant 0 : index
    %54 = vector.load %arg8[%c0_23, %c0_24] : memref<32x32xbf16, #tpu.memory_space<vmem>>, vector<32x32xbf16>
    %cst_25 = arith.constant dense<0.000000e+00> : vector<8x32xf32>
    %55 = tpu.matmul %53, %54, %cst_25 {dimension_numbers = #tpu.dot_dimension_numbers<[1], [0], [0], [1], [0, 0, 1, 1], [], []>} : vector<8x32xbf16>, vector<32x32xbf16>, vector<8x32xf32> -> vector<8x32xf32>
    %c0_26 = arith.constant 0 : index
    %c0_27 = arith.constant 0 : index
    %56 = vector.load %arg9[%c0_26, %c0_27] : memref<1x32xf32, #tpu.memory_space<vmem>>, vector<1x32xf32>
    %57 = vector.broadcast %56 : vector<1x32xf32> to vector<8x32xf32>
    %58 = arith.addf %55, %57 : vector<8x32xf32>
    %59 = arith.addf %9, %58 : vector<8x32xf32>
    %c0_28 = arith.constant 0 : index
    %c0_29 = arith.constant 0 : index
    %60 = vector.load %arg10[%c0_28, %c0_29] : memref<1x32xf32, #tpu.memory_space<vmem>>, vector<1x32xf32>
    %c0_30 = arith.constant 0 : index
    %c0_31 = arith.constant 0 : index
    %61 = vector.load %arg11[%c0_30, %c0_31] : memref<1x32xf32, #tpu.memory_space<vmem>>, vector<1x32xf32>
    %cst_32 = arith.constant dense<0.000000e+00> : vector<8xf32>
    %62 = vector.multi_reduction <add>, %59, %cst_32 [1] : vector<8x32xf32> to vector<8xf32>
    %63 = vector.shape_cast %62 : vector<8xf32> to vector<8x1xf32>
    %cst_33 = arith.constant 3.200000e+01 : f32
    %64 = vector.broadcast %cst_33 : f32 to vector<8x1xf32>
    %65 = arith.divf %63, %64 : vector<8x1xf32>
    %66 = vector.broadcast %65 : vector<8x1xf32> to vector<8x32xf32>
    %67 = arith.subf %59, %66 : vector<8x32xf32>
    %68 = arith.mulf %67, %67 : vector<8x32xf32>
    %cst_34 = arith.constant dense<0.000000e+00> : vector<8xf32>
    %69 = vector.multi_reduction <add>, %68, %cst_34 [1] : vector<8x32xf32> to vector<8xf32>
    %70 = vector.shape_cast %69 : vector<8xf32> to vector<8x1xf32>
    %cst_35 = arith.constant 3.200000e+01 : f32
    %71 = vector.broadcast %cst_35 : f32 to vector<8x1xf32>
    %72 = arith.divf %70, %71 : vector<8x1xf32>
    %cst_36 = arith.constant 9.99999974E-6 : f32
    %73 = vector.broadcast %cst_36 : f32 to vector<8x1xf32>
    %74 = arith.addf %72, %73 : vector<8x1xf32>
    %75 = math.rsqrt %74 : vector<8x1xf32>
    %76 = vector.broadcast %75 : vector<8x1xf32> to vector<8x32xf32>
    %77 = arith.mulf %67, %76 : vector<8x32xf32>
    %78 = vector.broadcast %60 : vector<1x32xf32> to vector<8x32xf32>
    %79 = arith.mulf %77, %78 : vector<8x32xf32>
    %80 = vector.broadcast %61 : vector<1x32xf32> to vector<8x32xf32>
    %81 = arith.addf %79, %80 : vector<8x32xf32>
    %82 = arith.truncf %81 : vector<8x32xf32> to vector<8x32xbf16>
    %c0_37 = arith.constant 0 : index
    %c0_38 = arith.constant 0 : index
    %83 = vector.load %arg12[%c0_37, %c0_38] : memref<32x128xbf16, #tpu.memory_space<vmem>>, vector<32x128xbf16>
    %cst_39 = arith.constant dense<0.000000e+00> : vector<8x128xf32>
    %84 = tpu.matmul %82, %83, %cst_39 {dimension_numbers = #tpu.dot_dimension_numbers<[1], [0], [0], [1], [0, 0, 1, 1], [], []>} : vector<8x32xbf16>, vector<32x128xbf16>, vector<8x128xf32> -> vector<8x128xf32>
    %c0_40 = arith.constant 0 : index
    %c0_41 = arith.constant 0 : index
    %85 = vector.load %arg13[%c0_40, %c0_41] : memref<1x128xf32, #tpu.memory_space<vmem>>, vector<1x128xf32>
    %86 = vector.broadcast %85 : vector<1x128xf32> to vector<8x128xf32>
    %87 = arith.addf %84, %86 : vector<8x128xf32>
    %cst_42 = arith.constant 5.000000e-01 : f32
    %88 = vector.broadcast %cst_42 : f32 to vector<8x128xf32>
    %89 = arith.mulf %88, %87 : vector<8x128xf32>
    %90 = arith.mulf %87, %87 : vector<8x128xf32>
    %91 = arith.mulf %90, %87 : vector<8x128xf32>
    %cst_43 = arith.constant 4.471500e-02 : f32
    %92 = vector.broadcast %cst_43 : f32 to vector<8x128xf32>
    %93 = arith.mulf %92, %91 : vector<8x128xf32>
    %94 = arith.addf %87, %93 : vector<8x128xf32>
    %cst_44 = arith.constant 0.797884583 : f32
    %95 = vector.broadcast %cst_44 : f32 to vector<8x128xf32>
    %96 = arith.mulf %95, %94 : vector<8x128xf32>
    %97 = math.tanh %96 : vector<8x128xf32>
    %cst_45 = arith.constant 1.000000e+00 : f32
    %98 = vector.broadcast %cst_45 : f32 to vector<8x128xf32>
    %99 = arith.addf %98, %97 : vector<8x128xf32>
    %100 = arith.mulf %89, %99 : vector<8x128xf32>
    %101 = arith.truncf %100 : vector<8x128xf32> to vector<8x128xbf16>
    %c0_46 = arith.constant 0 : index
    %c0_47 = arith.constant 0 : index
    %102 = vector.load %arg14[%c0_46, %c0_47] : memref<128x32xbf16, #tpu.memory_space<vmem>>, vector<128x32xbf16>
    %cst_48 = arith.constant dense<0.000000e+00> : vector<8x32xf32>
    %103 = tpu.matmul %101, %102, %cst_48 {dimension_numbers = #tpu.dot_dimension_numbers<[1], [0], [0], [1], [0, 0, 1, 1], [], []>} : vector<8x128xbf16>, vector<128x32xbf16>, vector<8x32xf32> -> vector<8x32xf32>
    %c0_49 = arith.constant 0 : index
    %c0_50 = arith.constant 0 : index
    %104 = vector.load %arg15[%c0_49, %c0_50] : memref<1x32xf32, #tpu.memory_space<vmem>>, vector<1x32xf32>
    %105 = vector.broadcast %104 : vector<1x32xf32> to vector<8x32xf32>
    %106 = arith.addf %103, %105 : vector<8x32xf32>
    %107 = arith.addf %59, %106 : vector<8x32xf32>
    %c0_51 = arith.constant 0 : index
    %c0_52 = arith.constant 0 : index
    %c0_53 = arith.constant 0 : index
    %108 = vector.load %arg16[%c0_51, %c0_52, %c0_53] : memref<1x8x32xf32, #tpu.memory_space<vmem>>, vector<1x8x32xf32>
    %109 = vector.shape_cast %108 : vector<1x8x32xf32> to vector<8x32xf32>
    %110 = vector.shape_cast %107 : vector<8x32xf32> to vector<1x8x32xf32>
    tpu.vector_store %arg16[%c0_51, %c0_52, %c0_53], %110 {strides = array<i32>} : memref<1x8x32xf32, #tpu.memory_space<vmem>>, vector<1x8x32xf32>,
    return
  }
  func.func @transform_0(%arg0: i32, %arg1: i32) -> (i32, i32, i32) {
    %c0_i32 = arith.constant 0 : i32
    %c0_i32_0 = arith.constant 0 : i32
    %c0_i32_1 = arith.constant 0 : i32
    return %arg0, %c0_i32, %c0_i32_0 : i32, i32, i32
  }
  func.func @transform_1(%arg0: i32, %arg1: i32) -> (i32, i32) {
    %c0_i32 = arith.constant 0 : i32
    %c0_i32_0 = arith.constant 0 : i32
    %c0_i32_1 = arith.constant 0 : i32
    return %c0_i32, %c0_i32_0 : i32, i32
  }
  func.func @transform_2(%arg0: i32, %arg1: i32) -> (i32, i32) {
    %c0_i32 = arith.constant 0 : i32
    %c0_i32_0 = arith.constant 0 : i32
    %c0_i32_1 = arith.constant 0 : i32
    return %c0_i32, %c0_i32_0 : i32, i32
  }
  func.func @transform_3(%arg0: i32, %arg1: i32) -> (i32, i32) {
    %c0_i32 = arith.constant 0 : i32
    %c0_i32_0 = arith.constant 0 : i32
    %c0_i32_1 = arith.constant 0 : i32
    return %c0_i32, %c0_i32_0 : i32, i32
  }
  func.func @transform_4(%arg0: i32, %arg1: i32) -> (i32, i32) {
    %c0_i32 = arith.constant 0 : i32
    %c0_i32_0 = arith.constant 0 : i32
    %c0_i32_1 = arith.constant 0 : i32
    return %c0_i32, %c0_i32_0 : i32, i32
  }
  func.func @transform_5(%arg0: i32, %arg1: i32) -> (i32, i32) {
    %c0_i32 = arith.constant 0 : i32
    %c0_i32_0 = arith.constant 0 : i32
    %c0_i32_1 = arith.constant 0 : i32
    return %c0_i32, %c0_i32_0 : i32, i32
  }
  func.func @transform_6(%arg0: i32, %arg1: i32) -> (i32, i32) {
    %c0_i32 = arith.constant 0 : i32
    %c0_i32_0 = arith.constant 0 : i32
    %c0_i32_1 = arith.constant 0 : i32
    return %c0_i32, %c0_i32_0 : i32, i32
  }
  func.func @transform_7(%arg0: i32, %arg1: i32) -> (i32, i32) {
    %c0_i32 = arith.constant 0 : i32
    %c0_i32_0 = arith.constant 0 : i32
    %c0_i32_1 = arith.constant 0 : i32
    return %c0_i32, %c0_i32_0 : i32, i32
  }
  func.func @transform_8(%arg0: i32, %arg1: i32) -> (i32, i32) {
    %c0_i32 = arith.constant 0 : i32
    %c0_i32_0 = arith.constant 0 : i32
    %c0_i32_1 = arith.constant 0 : i32
    return %c0_i32, %c0_i32_0 : i32, i32
  }
  func.func @transform_9(%arg0: i32, %arg1: i32) -> (i32, i32) {
    %c0_i32 = arith.constant 0 : i32
    %c0_i32_0 = arith.constant 0 : i32
    %c0_i32_1 = arith.constant 0 : i32
    return %c0_i32, %c0_i32_0 : i32, i32
  }
  func.func @transform_10(%arg0: i32, %arg1: i32) -> (i32, i32) {
    %c0_i32 = arith.constant 0 : i32
    %c0_i32_0 = arith.constant 0 : i32
    %c0_i32_1 = arith.constant 0 : i32
    return %c0_i32, %c0_i32_0 : i32, i32
  }
  func.func @transform_11(%arg0: i32, %arg1: i32) -> (i32, i32) {
    %c0_i32 = arith.constant 0 : i32
    %c0_i32_0 = arith.constant 0 : i32
    %c0_i32_1 = arith.constant 0 : i32
    return %c0_i32, %c0_i32_0 : i32, i32
  }
  func.func @transform_12(%arg0: i32, %arg1: i32) -> (i32, i32) {
    %c0_i32 = arith.constant 0 : i32
    %c0_i32_0 = arith.constant 0 : i32
    %c0_i32_1 = arith.constant 0 : i32
    return %c0_i32, %c0_i32_0 : i32, i32
  }
  func.func @transform_13(%arg0: i32, %arg1: i32) -> (i32, i32) {
    %c0_i32 = arith.constant 0 : i32
    %c0_i32_0 = arith.constant 0 : i32
    %c0_i32_1 = arith.constant 0 : i32
    return %c0_i32, %c0_i32_0 : i32, i32
  }
  func.func @transform_14(%arg0: i32, %arg1: i32) -> (i32, i32, i32) {
    %c0_i32 = arith.constant 0 : i32
    %c0_i32_0 = arith.constant 0 : i32
    return %arg0, %arg1, %c0_i32 : i32, i32, i32
  }
}

</mosaic_0001>

<bundles_post_ra>
// kernel: tpu_custom_call.1
= control target key start
LH: loop header
LB: loop body
LE: loop exit
PB: predicated region body
PF: predicated region fallthrough
CT: control target
= control target key end

     0   :  { %19 = vsyncpa [#allocation5], 0  ;;  %s3244_s0 = inlined_call_operand.vmem [shape: f32[2,8,32], index: 0, kind: input, shape index: {}]   ;;  %s3245_s1 = inlined_call_operand.vmem [shape: f32[1,32], index: 1, kind: input, shape index: {}]   ;;  %s3246_s2 = inlined_call_operand.vmem [shape: f32[1,32], index: 2, kind: input, shape index: {}]   ;;  %s3247_s3 = inlined_call_operand.vmem [shape: bf16[32,32], index: 3, kind: input, shape index: {}]   ;;  %s3248_s4 = inlined_call_operand.vmem [shape: bf16[32,32], index: 4, kind: input, shape index: {}]   ;;  %s3249_s5 = inlined_call_operand.vmem [shape: bf16[32,32], index: 5, kind: input, shape index: {}]   ;;  %s3250_s6 = inlined_call_operand.vmem [shape: bf16[32,32], index: 6, kind: input, shape index: {}]   ;;  %s3251_s7 = inlined_call_operand.vmem [shape: f32[1,32], index: 7, kind: input, shape index: {}]   ;;  %s3252_s8 = inlined_call_operand.vmem [shape: f32[1,32], index: 8, kind: input, shape index: {}]   ;;  %s3253_s9 = inlined_call_operand.vmem [shape: f32[1,32], index: 9, kind: input, shape index: {}]   ;;  %s3254_s10 = inlined_call_operand.hbm [shape: bf16[32,128], index: 10, kind: input, shape index: {}]   ;;  %s3255_s11 = inlined_call_operand.hbm [shape: f32[1,128], index: 11, kind: input, shape index: {}]   ;;  %s3256_s12 = inlined_call_operand.vmem [shape: bf16[128,32], index: 12, kind: input, shape index: {}]   ;;  %s3257_s13 = inlined_call_operand.vmem [shape: f32[1,32], index: 13, kind: input, shape index: {}]   ;;  %s3258_s14 = inlined_call_operand.hbm [shape: f32[2,8,32], index: 14, kind: output, shape index: {}]  }
   0x1   :  { %20 = vsyncpa [#allocation8], 0 }
   0x2   :  { %21 = vsyncpa [#allocation6], 0 }
   0x3   :  { %23 = vsyncpa [#allocation6 + $0x1], 0  ;;  %s2807_s29 = smov 0   ;;  %s2809_s30 = smov 0  }
   0x4   :  { %s2811_s15 = smov 0   ;;  %s2813_s16 = smov 0  }
   0x5   :  { %s2815_s17 = smov 0   ;;  %s2817_s18 = smov 0  }
   0x6 LB: > { %3266 = sst [smem:[#allocation13_spill]] %s2694_s29  ;;  %s2243_s19 = sadd.s32 4294967295, %s2714_s18   ;;  %s2714_s18 = sphi %s2817_s18, %s29_s18   ;;  %s2710_s17 = sphi %s2815_s17, %s3285_s17   ;;  %s2706_s16 = sphi %s2813_s16, %s3284_s16   ;;  %s2702_s15 = sphi %s2811_s15, %s3283_s15   ;;  %s2698_s30 = sphi %s2809_s30, %s3287_s30   ;;  %s2694_s29 = sphi %s2807_s29, %s3286_s29  }
   0x7   : > { %3267 = sst [smem:[#allocation14_spill]] %s2702_s15  ;;  %s2244_s20 = sadd.s32 4294967294, %s2714_s18  }
   0x8   : > { %3268 = sst [smem:[#allocation15_spill]] %s2710_s17  ;;  %s41_s21 = sadd.s32 1, %s2710_s17 }
   0x9   : > { %3269 = sst [smem:[#allocation16_spill]] %s2714_s18  ;;  %s349_s22 = sadd.s32 1, %s2702_s15 }
   0xa   : > { %p43_p0 = scmp.ge.s32.totalorder %s41_s21, 2  ;;  %p359_p1 = scmp.ne.s32.totalorder %s2702_s15, %s2698_s30 }
   0xb   : > { %p360_p2 = scmp.eq.s32.totalorder %s2243_s19, 1  ;;  %p365_p3 = scmp.ne.s32.totalorder %s2698_s30, %s2694_s29 }
   0xc   : > { %s3289_s21 = smov (%p43_p0, %s41_s21), 0  ;;  %p366_p5 = scmp.eq.s32.totalorder %s2244_s20, 1 }
   0xd   : > { %3270 = sst [smem:[#allocation17_spill]] %s3289_s21  ;;  %p2847_p4 = por %p360_p2, %p359_p1 }
   0xe   : > { %s344_s24 = ssub.s32 %s2710_s17, %s3289_s21  ;;  %p2245_p6 = scmp.ge.s32.totalorder %s2714_s18, 1 }
   0xf   : > { %p347_p7 = scmp.eq.s32.totalorder %s344_s24, 0  ;;  %p2854_p8 = por %p366_p5, %p365_p3 }
  0x10   : > { %p373_p9 = scmp.lt.s32.totalorder %s2714_s18, 3  ;;  %p2866_p11 = scmp.eq.s32.totalorder %s2243_s19, 0 }
  0x11   : > { %s3272_s25 = scalar_select %p2854_p8, 1, 0 }
  0x12   : > { %s2860_s26 = scalar_select %p347_p7, %s2702_s15, %s349_s22  }
  0x13   : > { %3273 = sst [smem:[#allocation18_spill]] %s3272_s25  ;;  %p2862_p10 = pnand %p2245_p6, %p373_p9 }
  0x14   : > { %3274 = sst [smem:[#allocation19_spill]] %s2860_s26  ;;  %s2716_s20 = smov [#allocation4]  }
  0x15   : > { %p2456_p12 = pneg %p2862_p10  ;;  %s412_s24 = sshll.u32 %s2716_s20, 4  ;;  %s413_s24 = int_to_ptr.vmem [resolvable:$true] %s412_s24 }
  0x16   : > { %s2717_s22 = smov [#allocation7]   ;;  %s2589_s19 = scalar_lea.vmem %s413_s24, 256 }
  0x17   : > { %p2874_p13 = pnand %p2866_p11, %p2456_p12  ;;  %s426_s17 = sshll.u32 %s2717_s22, 4  ;;  %s427_s17 = int_to_ptr.vmem [resolvable:$true] %s426_s17 }
  0x18   : > { %p2590_p1 = scmp.ne.s32.totalorder %s413_s24, %s2589_s19  ;;  %p2597_p5 = scmp.lt.s32.totalorder %s413_s24, %s413_s24 }
  0x19   : > { %p2580_p0 = pneg %p2874_p13  ;;  %p2598_p6 = scmp.lt.s32.totalorder %s2589_s19, %s2589_s19 }
  0x1b   : > { %p2592_p2 = pnand %p2590_p1, %p2580_p0  ;;  %p2599_p7 = por %p2598_p6, %p2597_p5 }
  0x1d   : > { %p2593_p3 = pneg %p2592_p2 }
  0x1f   : > { %p2600_p9 = pnand %p2599_p7, %p2593_p3 }
  0x21   : > { %2603 = shalt.err (!%p2600_p9)
}
  0x22   : > { %s2718_s20 = smov 64   ;;  %s2719_s26 = smov 4  }
  0x23   : > { %2459 = dma.hbm_to_vmem [thread:$0]  (!%p2874_p13), %s3254_s10, 256, %s413_s24, [#allocation5], %s2718_s20, %s2718_s20, %s2719_s26  }
  0x24   : > { %s2615_s25 = scalar_lea.vmem %s427_s17, 16  ;;  %s2622_s29 = scalar_lea.vmem %s427_s17, 32 }
  0x25   : > { %p2616_p12 = scmp.ne.s32.totalorder %s427_s17, %s2615_s25  ;;  %p2623_p8 = scmp.lt.s32.totalorder %s427_s17, %s427_s17 }
  0x26   : > { %p2624_p5 = scmp.lt.s32.totalorder %s2622_s29, %s2615_s25 }
  0x27   : > { %p2618_p1 = pnand %p2616_p12, %p2580_p0 }
  0x28   : > { %p2625_p3 = por %p2624_p5, %p2623_p8 }
  0x29   : > { %p2619_p2 = pneg %p2618_p1 }
  0x2b   : > { %p2626_p6 = pnand %p2625_p3, %p2619_p2 }
  0x2d   : > { %2629 = shalt.err (!%p2626_p6)
}
  0x2e   : > { %2462 = dma.hbm_to_vmem [thread:$0]  (!%p2874_p13), %s3255_s11, 16, %s427_s17, [#allocation8]  }
  0x2f   : > { %452 = sbr.rel (%p2862_p10) target bundleno = 2519 (0x9d7), region = 76 }
  0x34   : > { %2681 = dma.done.wait (%p2866_p11), [#allocation5], 256  }
  0x35   : > { %2683 = vsyncadd (%p2866_p11), [#allocation5], 4294967040 }
  0x36   : > { %2685 = dma.done.wait (%p2866_p11), [#allocation8], 16  }
  0x37   : > { %2687 = vsyncadd (%p2866_p11), [#allocation8], 4294967280  ;;  %p501_p8 = scmp.lt.s32.totalorder %s2706_s16, 1  ;;  %vm513_vm0 = vcmask 261120   ;;  %v2535_v12 = vld [vmem:[%s3248_s4 + $0x8] sm:$0xff]   ;;  %v2720_v13 = vmov 0.0   ;;  %v529_v51 = vlaneseq }
  0x38   : > { %2338 = vmatprep.subr.bf16.mxu0 %v2720_v13  ;;  %vm2721_vm1 = vmmov 0   ;;  %v2536_v14 = vld [vmem:[%s3248_s4] sm:$0xff]   ;;  %2362 = vmatprep.subr.bf16.mxu1 %v2720_v13  ;;  %v2537_v27 = vld [vmem:[%s3249_s5 + $0x8] sm:$0xff]   ;;  %s2722_s24 = smov 112   ;;  %s2723_s20 = smov 120   ;;  %vm832_vm2 = vcmask 60416  }
  0x39   : > { %s502_s29 = scalar_select %p501_p8, %s2706_s16, 1  ;;  %2342 = vmatprep.mubr.msk.bf16.mxu0 %vm2721_vm1, %v2720_v13  ;;  %2339 = vmatpush3.bf16.msra.mxu0 %v2535_v12  ;;  %v2296_v22 = vld [vmem:[%s3245_s1] ss:$0 sm:$0xff]  ;;  %v2539_v32 = vld [vmem:[%s3247_s3 + $0x8] sm:$0xff]   ;;  %v2725_v52 = vmov 1983009808  }
  0x3a   : > { %2340 = vmatprep.subr.bf16.mxu0 %v2720_v13  ;;  %2364 = vmatprep.mubr.msk.bf16.mxu1 %vm2721_vm1, %v2720_v13  ;;  %v2297_v24 = vld [vmem:[%s3246_s2] ss:$0 sm:$0xff]  ;;  %s2724_s22 = smov 104   ;;  %v668_v53 = vunpack.c.l.s4 %v2725_v52  ;;  %v530_v54 = vshrl.u32 %v529_v51, 7  ;;  %v2726_v56 = vmov 1934713408  }
  0x3b   : > { %s2253_s15 = sshll.u32 %s502_s29, 3  ;;  %v2538_v30 = vld [vmem:[%s3249_s5] sm:$0xff]   ;;  %v685_v57 = vunpack.c.l.s4 %v2726_v56  ;;  %vm1278_vm3 = vcmask 64512   ;;  %vm1514_vm4 = vcmask 1043456   ;;  %s2728_s18 = smov 16   ;;  %vm1845_vm5 = vcmask 130048  }
  0x3c   : > { %s2911_s21 = scalar_lea.vmem %s3244_s0, %s2253_s15  ;;  %v2540_v34 = vld [vmem:[%s3247_s3] sm:$0xff]   ;;  %v669_v55 = vunpack.c.0.s8 %v668_v53  ;;  %s2729_s25 = smov 8   ;;  %vm1847_vm6 = vcmask 195584  }
  0x3d   : > { %v512_v0 = vld [vmem:[%s2911_s21] sm:$0xff]  ;;  %2341 = vmatpush3.bf16.msra.mxu0 %v2536_v14  ;;  %v686_v59 = vunpack.c.0.s8 %v685_v57  ;;  %s2730_s26 = smov 24   ;;  %s498_s17 = sand.u32 1, %s2698_s30  }
  0x3e   : > { %v514_v1 = vsel %vm513_vm0, %v512_v0, 0.0  ;;  %2346 = vmatprep.subr.bf16.mxu0 %v2720_v13  ;;  %v2970_v58 = vsub.s32 %v669_v55, %v530_v54  ;;  %s2293_s27 = sshll.u32 %s2706_s16, 7  ;;  %s2137_s16 = scalar_lea.sflag [#allocation6], %s498_s17 }
  0x3f   : > { %515 = vadd.xlane.f32.xlu0 %v514_v1  ;;  %v2972_v61 = vsub.s32 %v686_v59, %v530_v54  ;;  %s2731_s29 = smov [#allocation9]  }
  0x40   : > { %s2634_s15 = sshll.u32 %s2731_s29, 4  ;;  %s2635_s15 = int_to_ptr.vmem [resolvable:$false] %s2634_s15 }
  0x43   : > { %1018 = vadd.xlane.f32.xlu0 %v514_v1 }
  0xc8   : > { %v516_v2 = vpop.xlane.xlu0 %515 }
  0xc9   : > { %v518_v3 = vmul.f32 0.03125, %v516_v2 }
  0xcb   : > { %v519_v4 = vsub.f32 %v512_v0, %v518_v3 }
  0xcc   : > { %v1019_v5 = vpop.xlane.xlu0 %1018 }
  0xcd   : > { %v1021_v6 = vmul.f32 0.03125, %v1019_v5  ;;  %v520_v7 = vmul.f32 %v519_v4, %v519_v4 }
  0xcf   : > { %v1022_v8 = vsub.f32 %v512_v0, %v1021_v6  ;;  %v521_v9 = vsel %vm513_vm0, %v520_v7, 0.0 }
  0xd0   : > { %522 = vadd.xlane.f32.xlu1 %v521_v9 }
  0xd1   : > { %v1023_v10 = vmul.f32 %v1022_v8, %v1022_v8 }
  0xd3   : > { %v1024_v11 = vsel %vm513_vm0, %v1023_v10, 0.0  ;;  %v2727_v10 = vmov 0  }
  0xd4   : > { %1025 = vadd.xlane.f32.xlu1 %v1024_v11 }
 0x159   : > { %v523_v15 = vpop.xlane.xlu1 %522 }
 0x15a   : > { %v524_v16 = vmul.f32 0.03125, %v523_v15 }
 0x15c   : > { %v525_v17 = vadd.f32 1e-05, %v524_v16 }
 0x15d   : > { %v1026_v18 = vpop.xlane.xlu1 %1025 }
 0x15e   : > { %2553 = vrsqrt.f32 %v525_v17  ;;  %v1027_v19 = vmul.f32 0.03125, %v1026_v18 }
 0x160   : > { %v1028_v20 = vadd.f32 1e-05, %v1027_v19 }
 0x162   : > { %2555 = vrsqrt.f32 %v1028_v20 }
 0x16b   : > { %v2554_v21 = vpop.eup %2553 }
 0x16c   : > { %v527_v23 = vmul.f32 %v2554_v21, %v519_v4 }
 0x16e   : > { %v534_v25 = vmul.f32 %v2296_v22, %v527_v23 }
 0x16f   : > { %v2556_v29 = vpop.eup %2555 }
 0x170   : > { %v541_v26 = vadd.f32 %v2297_v24, %v534_v25  ;;  %v1030_v31 = vmul.f32 %v2556_v29, %v1022_v8 }
 0x172   : > { %v542_v28 = vpack.c.bf16 %v541_v26, %v541_v26  ;;  %v1037_v33 = vmul.f32 %v2296_v22, %v1030_v31 }
 0x174   : > { %2343 = vmatmul.mubr.msk.bf16.vlgmr.msra.gmra.mxu0 %vm513_vm0, %v542_v28  ;;  %v1044_v35 = vadd.f32 %v2297_v24, %v1037_v33 }
 0x175   : > { %2347 = vmatpush3.bf16.msra.mxu0 %v2537_v27  ;;  %2350 = vmatprep.mubr.msk.bf16.mxu0 %vm2721_vm1, %v2720_v13 }
 0x176   : > { %2348 = vmatprep.subr.bf16.mxu0 %v2720_v13  ;;  %v1045_v36 = vpack.c.bf16 %v1044_v35, %v1044_v35 }
 0x179   : > { %2349 = vmatpush3.bf16.msra.mxu0 %v2538_v30 }
 0x17a   : > { %2354 = vmatprep.subr.bf16.mxu0 %v2720_v13 }
 0x17c   : > { %2351 = vmatmul.mubr.msk.bf16.vlgmr.msra.gmra.mxu0 %vm513_vm0, %v542_v28 }
 0x17d   : > { %2355 = vmatpush3.bf16.msra.mxu0 %v2539_v32  ;;  %2358 = vmatprep.mubr.msk.bf16.mxu0 %vm2721_vm1, %v2720_v13 }
 0x17e   : > { %2356 = vmatprep.subr.bf16.mxu0 %v2720_v13 }
 0x181   : > { %2357 = vmatpush3.bf16.msra.mxu0 %v2540_v34 }
 0x182   : > { %2368 = vmatprep.subr.bf16.mxu0 %v2720_v13 }
 0x184   : > { %2359 = vmatmul.mubr.msk.bf16.vlgmr.msra.gmra.mxu0 %vm513_vm0, %v1045_v36 }
 0x185   : > { %2370 = vmatprep.mubr.msk.bf16.mxu0 %vm2721_vm1, %v2720_v13 }
 0x234   : > { %v596_v37 = vpop.f32.mrf.mxu0 }
 0x235   : > { %v602_v38 = vpack.c.bf16 %v596_v37, %v596_v37 }
 0x236   : > { %v2344_v39 = vpop.f32.mrf.mxu0 }
 0x237   : > { %663 = vrot.lane.b32.xlu1 %v602_v38, %s2722_s24  ;;  %661 = vrot.lane.b32.xlu0 %v602_v38, %s2723_s20  ;;  %v673_v62 = vrot.slane %v602_v38, %v2970_v58 }
 0x238   : > { %v599_v40 = vpop.f32.mrf.mxu0 }
 0x23a   : > { %v2345_v41 = vpop.f32.mrf.mxu0 }
 0x23b   : > { %665 = vrot.lane.b32.xlu1 %v602_v38, %s2724_s22 }
 0x23c   : > { %v2965_v42 = vpop.f32.mrf.mxu0 }
 0x23e   : > { %v2352_v43 = vpop.f32.mrf.mxu0 }
 0x240   : > { %v656_v44 = vpop.f32.mrf.mxu0 }
 0x242   : > { %v2353_v45 = vpop.f32.mrf.mxu0 }
 0x244   : > { %v1099_v46 = vpop.f32.mrf.mxu0 }
 0x245   : > { %v1105_v47 = vpack.c.bf16 %v1099_v46, %v1099_v46 }
 0x246   : > { %v2360_v48 = vpop.f32.mrf.mxu0 }
 0x247   : > { %1109 = vrot.lane.b32.xlu0 %v1105_v47, %s2722_s24  ;;  %1107 = vrot.lane.b32.xlu1 %v1105_v47, %s2723_s20  ;;  %v1119_v39 = vrot.slane %v1105_v47, %v2970_v58 }
 0x248   : > { %v1102_v49 = vpop.f32.mrf.mxu0 }
 0x24a   : > { %v2361_v50 = vpop.f32.mrf.mxu0 }
 0x24b   : > { %1111 = vrot.lane.b32.xlu1 %v1105_v47, %s2724_s22 }
 0x2a9   : > { %v664_v60 = vpop.permute.xlu1 %663  ;;  %v662_v2 = vpop.permute.xlu0 %661 }
 0x2aa   : > { %v681_v63 = vrot.slane %v664_v60, %v2970_v58  ;;  %v707_v6 = vrot.slane %v662_v2, %v2970_v58 }
 0x2ac   : > { %v682_v0 = vcombine.low %v673_v62, %v681_v63  ;;  %v683_v1 = vcombine.high %v673_v62, %v681_v63 }
 0x2ad   : > { %v666_v3 = vpop.permute.xlu1 %665 }
 0x2ae   : > { %v690_v4 = vrot.slane %v682_v0, %v2972_v61  ;;  %v715_v5 = vrot.slane %v666_v3, %v2970_v58  ;;  %v697_v7 = vrot.slane %v683_v1, %v2972_v61 }
 0x2b0   : > { %v716_v8 = vcombine.low %v707_v6, %v715_v5  ;;  %v717_v9 = vcombine.high %v707_v6, %v715_v5  ;;  %v698_v11 = vcombine.high %v690_v4, %v2727_v10  ;;  %v699_v15 = vcombine.high %v697_v7, %v2727_v10 }
 0x2b1   : > { %v738_v16 = vshrl.u32 %v690_v4, 16  ;;  %v754_v22 = vshrl.u32 %v697_v7, 16 }
 0x2b2   : > { %v724_v12 = vrot.slane %v716_v8, %v2972_v61  ;;  %v731_v14 = vrot.slane %v717_v9, %v2972_v61  ;;  %v746_v21 = vshrl.u32 %v698_v11, 16  ;;  %v762_v29 = vshrl.u32 %v699_v15, 16 }
 0x2b4   : > { %v732_v17 = vcombine.high %v724_v12, %v2727_v10  ;;  %v733_v18 = vcombine.high %v731_v14, %v2727_v10  ;;  %v736_v19 = vpack.i.b16 %v724_v12, %v690_v4  ;;  %v739_v20 = vshrl.u32 %v724_v12, 16 }
 0x2b5   : > { %v752_v23 = vpack.i.b16 %v731_v14, %v697_v7  ;;  %v755_v24 = vshrl.u32 %v731_v14, 16 }
 0x2b6   : > { %v740_v25 = vpack.i.b16 %v739_v20, %v738_v16  ;;  %v744_v26 = vpack.i.b16 %v732_v17, %v698_v11  ;;  %v747_v27 = vshrl.u32 %v732_v17, 16  ;;  %v760_v28 = vpack.i.b16 %v733_v18, %v699_v15 }
 0x2b7   : > { %v756_v30 = vpack.i.b16 %v755_v24, %v754_v22  ;;  %v763_v31 = vshrl.u32 %v733_v18, 16  ;;  %v766_v32 = vcombine.low %v736_v19, %v752_v23 }
 0x2b8   : > { %v748_v33 = vpack.i.b16 %v747_v27, %v746_v21  ;;  %v774_v34 = vcombine.low %v744_v26, %v760_v28 }
 0x2b9   : > { %v1110_v35 = vpop.permute.xlu0 %1109  ;;  %v1108_v36 = vpop.permute.xlu1 %1107  ;;  %v764_v37 = vpack.i.b16 %v763_v31, %v762_v29  ;;  %v791_v38 = vcombine.low %v740_v25, %v756_v30  ;;  %v773_v41 = vrot.slane %v766_v32, %v2970_v58 }
 0x2ba   : > { %v1127_v40 = vrot.slane %v1110_v35, %v2970_v58  ;;  %v781_v43 = vrot.slane %v774_v34, %v2970_v58  ;;  %v1153_v55 = vrot.slane %v1108_v36, %v2970_v58 }
 0x2bb   : > { %v799_v44 = vcombine.low %v748_v33, %v764_v37  ;;  %v798_v49 = vrot.slane %v791_v38, %v2970_v58 }
 0x2bc   : > { %v1128_v45 = vcombine.low %v1119_v39, %v1127_v40  ;;  %v1129_v46 = vcombine.high %v1119_v39, %v1127_v40  ;;  %v782_v48 = vcombine.low %v773_v41, %v781_v43 }
 0x2bd   : > { %v1112_v50 = vpop.permute.xlu1 %1111  ;;  %v806_v51 = vrot.slane %v799_v44, %v2970_v58 }
 0x2be   : > { %v1136_v52 = vrot.slane %v1128_v45, %v2972_v61  ;;  %v1143_v53 = vrot.slane %v1129_v46, %v2972_v61  ;;  %v1161_v47 = vrot.slane %v1112_v50, %v2970_v58  ;;  %v789_v54 = vrot.slane %v782_v48, %v2972_v61 }
 0x2bf   : > { %v807_v56 = vcombine.low %v798_v49, %v806_v51 }
 0x2c0   : > { %v1144_v57 = vcombine.high %v1136_v52, %v2727_v10  ;;  %v1145_v59 = vcombine.high %v1143_v53, %v2727_v10  ;;  %v790_v60 = vcombine.high %v789_v54, %v2727_v10  ;;  %v1162_v62 = vcombine.low %v1153_v55, %v1161_v47 }
 0x2c1   : > { %v814_v63 = vrot.slane %v807_v56, %v2972_v61  ;;  %v820_v0 = vshrl.u32 %v789_v54, 16  ;;  %v1184_v1 = vshrl.u32 %v1136_v52, 16  ;;  %v1163_v2 = vcombine.high %v1153_v55, %v1161_v47 }
 0x2c2   : > { %v1192_v3 = vshrl.u32 %v1144_v57, 16  ;;  %v1200_v4 = vshrl.u32 %v1143_v53, 16  ;;  %v1208_v5 = vshrl.u32 %v1145_v59, 16  ;;  %v1170_v6 = vrot.slane %v1162_v62, %v2972_v61 }
 0x2c3   : > { %v815_v7 = vcombine.high %v814_v63, %v2727_v10  ;;  %v818_v8 = vpack.i.b16 %v814_v63, %v789_v54  ;;  %v821_v9 = vshrl.u32 %v814_v63, 16  ;;  %v1177_v11 = vrot.slane %v1163_v2, %v2972_v61 }
 0x2c4   : > { %v828_v12 = vshrl.u32 %v790_v60, 16  ;;  %v1178_v14 = vcombine.high %v1170_v6, %v2727_v10  ;;  %v1182_v15 = vpack.i.b16 %v1170_v6, %v1136_v52  ;;  %v1185_v16 = vshrl.u32 %v1170_v6, 16 }
 0x2c5   : > { %v822_v17 = vpack.i.b16 %v821_v9, %v820_v0  ;;  %v826_v18 = vpack.i.b16 %v815_v7, %v790_v60  ;;  %v829_v19 = vshrl.u32 %v815_v7, 16  ;;  %833 = vst.msk [vmem:[#allocation2] sm:$0xf] %vm832_vm2, %v818_v8  ;;  %v1179_v20 = vcombine.high %v1177_v11, %v2727_v10 }
 0x2c6   : > { %v1186_v21 = vpack.i.b16 %v1185_v16, %v1184_v1  ;;  %v1190_v22 = vpack.i.b16 %v1178_v14, %v1144_v57  ;;  %v1193_v23 = vshrl.u32 %v1178_v14, 16  ;;  %v1198_v24 = vpack.i.b16 %v1177_v11, %v1143_v53 }
 0x2c7   : > { %v830_v25 = vpack.i.b16 %v829_v19, %v828_v12  ;;  %834 = vst.msk [vmem:[#allocation2 + $0x4] sm:$0xf] %vm832_vm2, %v822_v17  ;;  %835 = vst.msk [vmem:[#allocation2 + $0x8] sm:$0xf] %vm832_vm2, %v826_v18  ;;  %v1201_v26 = vshrl.u32 %v1177_v11, 16  ;;  %v1206_v27 = vpack.i.b16 %v1179_v20, %v1145_v59  ;;  %v1209_v28 = vshrl.u32 %v1179_v20, 16 }
 0x2c8   : > { %v1194_v29 = vpack.i.b16 %v1193_v23, %v1192_v3  ;;  %v1212_v30 = vcombine.low %v1182_v15, %v1198_v24  ;;  %v659_v23 = vpack.c.bf16 %v2965_v42, %v2965_v42 }
 0x2c9   : > { %836 = vst.msk [vmem:[#allocation2 + $0xc] sm:$0xf] %vm832_vm2, %v830_v25  ;;  %v1202_v31 = vpack.i.b16 %v1201_v26, %v1200_v4  ;;  %v1210_v32 = vpack.i.b16 %v1209_v28, %v1208_v5  ;;  %v1220_v33 = vcombine.low %v1190_v22, %v1206_v27 }
 0x2ca   : > { %v1219_v34 = vrot.slane %v1212_v30, %v2970_v58 }
 0x2cb   : > { %v1227_v35 = vrot.slane %v1220_v33, %v2970_v58  ;;  %v1237_v36 = vcombine.low %v1186_v21, %v1202_v31  ;;  %v1245_v37 = vcombine.low %v1194_v29, %v1210_v32  ;;  %v850_v32 = vrot.slane %v659_v23, %v2970_v58 }
 0x2cc   : > { %v1274_v38 = vld [vmem:[#allocation2] sm:$0xf] }
 0x2cd   : > { %v1244_v39 = vrot.slane %v1237_v36, %v2970_v58  ;;  %v1283_v40 = vsel %vm1278_vm3, %v1274_v38, 0  ;;  %v1228_v41 = vcombine.low %v1219_v34, %v1227_v35  ;;  %v1252_v43 = vrot.slane %v1245_v37, %v2970_v58 }
 0x2ce   : > { %2363 = vmatpush3.bf16.xpose.msra.mxu1 %v1283_v40  ;;  %v1275_v44 = vld [vmem:[#allocation2 + $0x4] sm:$0xf]  ;;  %v1276_v50 = vld [vmem:[#allocation2 + $0x8] sm:$0xf] }
 0x2cf   : > { %v1329_v45 = vsel %vm1278_vm3, %v1275_v44, 0  ;;  %v1235_v46 = vrot.slane %v1228_v41, %v2972_v61  ;;  %v1253_v48 = vcombine.low %v1244_v39, %v1252_v43  ;;  %2374 = vmatprep.subr.bf16.mxu1 %v2720_v13  ;;  %v1375_v54 = vsel %vm1278_vm3, %v1276_v50, 0 }
 0x2d0   : > { %2369 = vmatpush3.bf16.xpose.msra.mxu0 %v1329_v45  ;;  %v1277_v47 = vld [vmem:[#allocation2 + $0xc] sm:$0xf] }
 0x2d1   : > { %v1260_v49 = vrot.slane %v1253_v48, %v2972_v61  ;;  %2380 = vmatprep.subr.bf16.mxu0 %v2720_v13  ;;  %v1265_v52 = vshrl.u32 %v1235_v46, 16  ;;  %v1421_v57 = vsel %vm1278_vm3, %v1277_v47, 0  ;;  %v1236_v59 = vcombine.high %v1235_v46, %v2727_v10 }
 0x2d3   : > { %v1264_v51 = vpack.i.b16 %v1260_v49, %v1235_v46  ;;  %v1266_v53 = vshrl.u32 %v1260_v49, 16  ;;  %v1261_v56 = vcombine.high %v1260_v49, %v2727_v10  ;;  %v1271_v63 = vshrl.u32 %v1236_v59, 16 }
 0x2d5   : > { %2365 = vmatmul.mubr.msk.bf16.vlgmr.msra.gmra.mxu1 %vm1278_vm3, %v1264_v51  ;;  %v1267_v55 = vpack.i.b16 %v1266_v53, %v1265_v52  ;;  %v1272_v60 = vshrl.u32 %v1261_v56, 16  ;;  %v1270_v62 = vpack.i.b16 %v1261_v56, %v1236_v59 }
 0x2d6   : > { %2375 = vmatpush3.bf16.xpose.msra.mxu1 %v1375_v54  ;;  %2376 = vmatprep.mubr.msk.bf16.mxu1 %vm2721_vm1, %v2720_v13 }
 0x2d7   : > { %2371 = vmatmul.mubr.msk.bf16.vlgmr.msra.gmra.mxu0 %vm1278_vm3, %v1267_v55  ;;  %2386 = vmatprep.subr.bf16.mxu1 %v2720_v13  ;;  %v1273_v0 = vpack.i.b16 %v1272_v60, %v1271_v63 }
 0x2d8   : > { %2381 = vmatpush3.bf16.xpose.msra.mxu0 %v1421_v57  ;;  %2382 = vmatprep.mubr.msk.bf16.mxu0 %vm2721_vm1, %v2720_v13 }
 0x2d9   : > { %2392 = vmatprep.subr.bf16.mxu0 %v2720_v13 }
 0x2dd   : > { %2377 = vmatmul.mubr.msk.bf16.vlgmr.msra.gmra.mxu1 %vm1278_vm3, %v1270_v62 }
 0x2de   : > { %2388 = vmatprep.mubr.msk.bf16.mxu1 %vm2721_vm1, %v2720_v13 }
 0x2df   : > { %2383 = vmatmul.mubr.msk.bf16.vlgmr.msra.gmra.mxu0 %vm1278_vm3, %v1273_v0 }
 0x2e0   : > { %2394 = vmatprep.mubr.msk.bf16.mxu0 %vm2721_vm1, %v2720_v13 }
 0x395   : > { %v1319_v1 = vpop.f32.mrf.mxu1 }
 0x396   : > { %v1463_v2 = vsel %vm1278_vm3, %v1319_v1, -inf }
 0x397   : > { %1464 = vmax.xlane.f32.xlu0 %v1463_v2  ;;  %v2366_v3 = vpop.f32.mrf.mxu1  ;;  %v1365_v4 = vpop.f32.mrf.mxu0 }
 0x398   : > { %v1466_v5 = vsel %vm1278_vm3, %v1365_v4, -inf }
 0x399   : > { %v1322_v6 = vpop.f32.mrf.mxu1  ;;  %1467 = vmax.xlane.f32.xlu1 %v1466_v5  ;;  %v2372_v7 = vpop.f32.mrf.mxu0 }
 0x39b   : > { %v2367_v8 = vpop.f32.mrf.mxu1  ;;  %v1368_v9 = vpop.f32.mrf.mxu0 }
 0x39d   : > { %v2373_v11 = vpop.f32.mrf.mxu0  ;;  %v1411_v12 = vpop.f32.mrf.mxu1 }
 0x39e   : > { %v1469_v14 = vsel %vm1278_vm3, %v1411_v12, -inf }
 0x39f   : > { %1470 = vmax.xlane.f32.xlu0 %v1469_v14  ;;  %v2378_v15 = vpop.f32.mrf.mxu1  ;;  %v1457_v16 = vpop.f32.mrf.mxu0 }
 0x3a0   : > { %v1472_v19 = vsel %vm1278_vm3, %v1457_v16, -inf }
 0x3a1   : > { %v1414_v17 = vpop.f32.mrf.mxu1  ;;  %v2384_v18 = vpop.f32.mrf.mxu0 }
 0x3a3   : > { %v2379_v20 = vpop.f32.mrf.mxu1  ;;  %1473 = vmax.xlane.f32.xlu0 %v1472_v19  ;;  %v1460_v21 = vpop.f32.mrf.mxu0 }
 0x3a5   : > { %v2385_v22 = vpop.f32.mrf.mxu0 }
 0x3aa   : > { %840 = vrot.lane.b32.xlu1 %v659_v23, %s2722_s24 }
 0x3ae   : > { %842 = vrot.lane.b32.xlu1 %v659_v23, %s2724_s22  ;;  %s3197_s22 = scalar_lea.hbm %s3258_s14, %s2293_s27 }
 0x3b9   : > { %838 = vrot.lane.b32.xlu0 %v659_v23, %s2723_s20 }
 0x420   : > { %v1465_v24 = vpop.xlane.xlu0 %1464 }
 0x421   : > { %v1475_v25 = vsub.f32 %v1319_v1, %v1465_v24 }
 0x422   : > { %v1468_v26 = vpop.xlane.xlu1 %1467 }
 0x423   : > { %2557 = vpow2.f32 %v1475_v25  ;;  %v1476_v27 = vsub.f32 %v1365_v4, %v1468_v26 }
 0x425   : > { %2559 = vpow2.f32 %v1476_v27 }
 0x426   : > { %v841_v28 = vpop.permute.xlu1 %840 }
 0x427   : > { %v858_v29 = vrot.slane %v841_v28, %v2970_v58 }
 0x428   : > { %v1471_v30 = vpop.xlane.xlu0 %1470 }
 0x429   : > { %v1477_v31 = vsub.f32 %v1411_v12, %v1471_v30  ;;  %v859_v42 = vcombine.low %v850_v32, %v858_v29  ;;  %v860_v33 = vcombine.high %v850_v32, %v858_v29 }
 0x42a   : > { %v843_v35 = vpop.permute.xlu1 %842 }
 0x42b   : > { %2561 = vpow2.f32 %v1477_v31  ;;  %v867_v38 = vrot.slane %v859_v42, %v2972_v61  ;;  %v874_v39 = vrot.slane %v860_v33, %v2972_v61  ;;  %v892_v41 = vrot.slane %v843_v35, %v2970_v58 }
 0x42c   : > { %v1474_v34 = vpop.xlane.xlu0 %1473 }
 0x42d   : > { %v1478_v36 = vsub.f32 %v1457_v16, %v1474_v34  ;;  %v875_v50 = vcombine.high %v867_v38, %v2727_v10  ;;  %v876_v51 = vcombine.high %v874_v39, %v2727_v10  ;;  %v915_v47 = vshrl.u32 %v867_v38, 16 }
 0x42e   : > { %v931_v54 = vshrl.u32 %v874_v39, 16 }
 0x42f   : > { %2563 = vpow2.f32 %v1478_v36  ;;  %v923_v62 = vshrl.u32 %v875_v50, 16  ;;  %v939_v63 = vshrl.u32 %v876_v51, 16 }
 0x430   : > { %v3049_v37 = vpop.eup %2557  ;;  %v839_v40 = vpop.permute.xlu0 %838 }
 0x431   : > { %v884_v43 = vrot.slane %v839_v40, %v2970_v58  ;;  %v1483_v44 = vsel %vm1278_vm3, %v3049_v37, 0.0 }
 0x432   : > { %v3057_v45 = vpop.eup %2559  ;;  %1484 = vadd.xlane.f32.xlu1 %v1483_v44 }
 0x433   : > { %v893_v46 = vcombine.low %v884_v43, %v892_v41  ;;  %v894_v48 = vcombine.high %v884_v43, %v892_v41  ;;  %v1486_v49 = vsel %vm1278_vm3, %v3057_v45, 0.0 }
 0x434   : > { %1487 = vadd.xlane.f32.xlu0 %v1486_v49 }
 0x435   : > { %v901_v52 = vrot.slane %v893_v46, %v2972_v61  ;;  %v908_v53 = vrot.slane %v894_v48, %v2972_v61 }
 0x437   : > { %v909_v55 = vcombine.high %v901_v52, %v2727_v10  ;;  %v910_v56 = vcombine.high %v908_v53, %v2727_v10  ;;  %v913_v57 = vpack.i.b16 %v901_v52, %v867_v38  ;;  %v916_v59 = vshrl.u32 %v901_v52, 16 }
 0x438   : > { %v3067_v60 = vpop.eup %2561  ;;  %v929_v0 = vpack.i.b16 %v908_v53, %v874_v39  ;;  %v932_v1 = vshrl.u32 %v908_v53, 16 }
 0x439   : > { %v917_v2 = vpack.i.b16 %v916_v59, %v915_v47  ;;  %v921_v3 = vpack.i.b16 %v909_v55, %v875_v50  ;;  %v924_v4 = vshrl.u32 %v909_v55, 16  ;;  %v937_v5 = vpack.i.b16 %v910_v56, %v876_v51 }
 0x43a   : > { %v933_v6 = vpack.i.b16 %v932_v1, %v931_v54  ;;  %v940_v7 = vshrl.u32 %v910_v56, 16  ;;  %v943_v8 = vcombine.low %v913_v57, %v929_v0  ;;  %v1489_v9 = vsel %vm1278_vm3, %v3067_v60, 0.0 }
 0x43b   : > { %v925_v11 = vpack.i.b16 %v924_v4, %v923_v62  ;;  %v951_v12 = vcombine.low %v921_v3, %v937_v5  ;;  %1490 = vadd.xlane.f32.xlu0 %v1489_v9 }
 0x43c   : > { %v941_v14 = vpack.i.b16 %v940_v7, %v939_v63  ;;  %v968_v15 = vcombine.low %v917_v2, %v933_v6  ;;  %v3071_v16 = vpop.eup %2563  ;;  %v950_v17 = vrot.slane %v943_v8, %v2970_v58 }
 0x43d   : > { %v958_v18 = vrot.slane %v951_v12, %v2970_v58  ;;  %v1492_v20 = vsel %vm1278_vm3, %v3071_v16, 0.0 }
 0x43e   : > { %v976_v19 = vcombine.low %v925_v11, %v941_v14  ;;  %v975_v22 = vrot.slane %v968_v15, %v2970_v58 }
 0x43f   : > { %v959_v21 = vcombine.low %v950_v17, %v958_v18  ;;  %1493 = vadd.xlane.f32.xlu0 %v1492_v20 }
 0x440   : > { %v983_v23 = vrot.slane %v976_v19, %v2970_v58 }
 0x441   : > { %v966_v24 = vrot.slane %v959_v21, %v2972_v61 }
 0x442   : > { %v984_v25 = vcombine.low %v975_v22, %v983_v23 }
 0x443   : > { %v967_v26 = vcombine.high %v966_v24, %v2727_v10  ;;  %v997_v30 = vshrl.u32 %v966_v24, 16 }
 0x444   : > { %v991_v27 = vrot.slane %v984_v25, %v2972_v61 }
 0x445   : > { %v1005_v33 = vshrl.u32 %v967_v26, 16 }
 0x446   : > { %v992_v28 = vcombine.high %v991_v27, %v2727_v10  ;;  %v995_v29 = vpack.i.b16 %v991_v27, %v966_v24  ;;  %v998_v31 = vshrl.u32 %v991_v27, 16  ;;  %v2541_v27 = vld [vmem:[%s3250_s6 + $0x8] sm:$0xff]  }
 0x448   : > { %v999_v32 = vpack.i.b16 %v998_v31, %v997_v30  ;;  %v1003_v42 = vpack.i.b16 %v992_v28, %v967_v26  ;;  %v1006_v34 = vshrl.u32 %v992_v28, 16  ;;  %1009 = vst.msk [vmem:[#allocation3] sm:$0xf] %vm832_vm2, %v995_v29 }
 0x44a   : > { %v1007_v35 = vpack.i.b16 %v1006_v34, %v1005_v33  ;;  %1010 = vst.msk [vmem:[#allocation3 + $0x4] sm:$0xf] %vm832_vm2, %v999_v32  ;;  %1011 = vst.msk [vmem:[#allocation3 + $0x8] sm:$0xf] %vm832_vm2, %v1003_v42 }
 0x44c   : > { %1012 = vst.msk [vmem:[#allocation3 + $0xc] sm:$0xf] %vm832_vm2, %v1007_v35 }
 0x44f   : > { %v1507_v36 = vld [vmem:[#allocation3] sm:$0xf] }
 0x450   : > { %v1516_v10 = vsel %vm1514_vm4, %v1507_v36, 0  ;;  %v2542_v36 = vld [vmem:[%s3250_s6] sm:$0xff]  }
 0x451   : > { %2387 = vmatpush3.bf16.msra.mxu1 %v1516_v10  ;;  %v1508_v38 = vld [vmem:[#allocation3 + $0x4] sm:$0xf]  ;;  %v1509_v50 = vld [vmem:[#allocation3 + $0x8] sm:$0xf] }
 0x452   : > { %v1562_v39 = vsel %vm1514_vm4, %v1508_v38, 0  ;;  %2398 = vmatprep.subr.bf16.mxu1 %v2720_v13  ;;  %v1608_v47 = vsel %vm1514_vm4, %v1509_v50, 0 }
 0x453   : > { %2393 = vmatpush3.bf16.msra.mxu0 %v1562_v39  ;;  %v1510_v53 = vld [vmem:[#allocation3 + $0xc] sm:$0xf] }
 0x454   : > { %2404 = vmatprep.subr.bf16.mxu0 %v2720_v13  ;;  %v1654_v55 = vsel %vm1514_vm4, %v1510_v53, 0 }
 0x4bb   : > { %v1485_v40 = vpop.xlane.xlu1 %1484 }
 0x4bc   : > { %2565 = vrcp.f32 %v1485_v40 }
 0x4bd   : > { %v1488_v41 = vpop.xlane.xlu0 %1487 }
 0x4be   : > { %2567 = vrcp.f32 %v1488_v41 }
 0x4c4   : > { %v1491_v43 = vpop.xlane.xlu0 %1490 }
 0x4c5   : > { %2569 = vrcp.f32 %v1491_v43 }
 0x4c8   : > { %v1494_v44 = vpop.xlane.xlu0 %1493 }
 0x4c9   : > { %v2566_v46 = vpop.eup %2565  ;;  %2571 = vrcp.f32 %v1494_v44 }
 0x4ca   : > { %v1499_v48 = vmul.f32 %v2566_v46, %v3049_v37 }
 0x4cb   : > { %v2568_v49 = vpop.eup %2567 }
 0x4cc   : > { %v1503_v51 = vpack.c.bf16 %v1499_v48, %v1499_v48  ;;  %v1500_v52 = vmul.f32 %v2568_v49, %v3057_v45 }
 0x4ce   : > { %2389 = vmatmul.mubr.msk.bf16.vlgmr.msra.gmra.mxu1 %vm1278_vm3, %v1503_v51  ;;  %v1504_v54 = vpack.c.bf16 %v1500_v52, %v1500_v52 }
 0x4cf   : > { %2399 = vmatpush3.bf16.msra.mxu1 %v1608_v47  ;;  %2400 = vmatprep.mubr.msk.bf16.mxu1 %vm2721_vm1, %v2720_v13 }
 0x4d0   : > { %2395 = vmatmul.mubr.msk.bf16.vlgmr.msra.gmra.mxu0 %vm1278_vm3, %v1504_v54  ;;  %2410 = vmatprep.subr.bf16.mxu1 %v2720_v13 }
 0x4d1   : > { %2405 = vmatpush3.bf16.msra.mxu0 %v1654_v55  ;;  %2406 = vmatprep.mubr.msk.bf16.mxu0 %vm2721_vm1, %v2720_v13 }
 0x4d2   : > { %v2570_v37 = vpop.eup %2569  ;;  %2418 = vmatprep.subr.bf16.mxu0 %v2720_v13 }
 0x4d3   : > { %v1501_v45 = vmul.f32 %v2570_v37, %v3067_v60 }
 0x4d5   : > { %v1505_v56 = vpack.c.bf16 %v1501_v45, %v1501_v45 }
 0x4d6   : > { %v2572_v57 = vpop.eup %2571 }
 0x4d7   : > { %2401 = vmatmul.mubr.msk.bf16.vlgmr.msra.gmra.mxu1 %vm1278_vm3, %v1505_v56  ;;  %v1502_v59 = vmul.f32 %v2572_v57, %v3071_v16 }
 0x4d8   : > { %2414 = vmatprep.mubr.msk.bf16.mxu1 %vm2721_vm1, %v2720_v13  ;;  %2411 = vmatpush3.bf16.msra.mxu1 %v2541_v27  ;;  %v2548_v27 = vld [vmem:[%s3256_s12 + $0x20] sm:$0xff]  }
 0x4d9   : > { %v1506_v62 = vpack.c.bf16 %v1502_v59, %v1502_v59  ;;  %2412 = vmatprep.subr.bf16.mxu1 %v2720_v13  ;;  %v2273_v59 = vld [vmem:[%s3251_s7] ss:$0 sm:$0xff] }
 0x4db   : > { %2407 = vmatmul.mubr.msk.bf16.vlgmr.msra.gmra.mxu0 %vm1278_vm3, %v1506_v62 }
 0x4dc   : > { %2422 = vmatprep.mubr.msk.bf16.mxu0 %vm2721_vm1, %v2720_v13  ;;  %2413 = vmatpush3.bf16.msra.mxu1 %v2542_v36 }
 0x4dd   : > { %2426 = vmatprep.subr.bf16.mxu1 %v2720_v13 }
 0x58e   : > { %v1552_v63 = vpop.f32.mrf.mxu1 }
 0x590   : > { %v2390_v0 = vpop.f32.mrf.mxu1  ;;  %v1598_v1 = vpop.f32.mrf.mxu0 }
 0x592   : > { %v1555_v2 = vpop.f32.mrf.mxu1  ;;  %v2396_v60 = vpop.f32.mrf.mxu0 }
 0x594   : > { %v2391_v3 = vpop.f32.mrf.mxu1  ;;  %v1601_v4 = vpop.f32.mrf.mxu0 }
 0x596   : > { %v2397_v5 = vpop.f32.mrf.mxu0 }
 0x597   : > { %v1644_v6 = vpop.f32.mrf.mxu1 }
 0x598   : > { %v1696_v8 = vcombine.low %v1552_v63, %v1644_v6  ;;  %v1697_v9 = vcombine.high %v1552_v63, %v1644_v6 }
 0x599   : > { %v2402_v7 = vpop.f32.mrf.mxu1 }
 0x59a   : > { %v1704_v18 = vrot.slane %v1696_v8, %v2970_v58  ;;  %v1711_v19 = vrot.slane %v1697_v9, %v2970_v58 }
 0x59b   : > { %v1647_v11 = vpop.f32.mrf.mxu1  ;;  %v1690_v12 = vpop.f32.mrf.mxu0 }
 0x59c   : > { %v1712_v14 = vcombine.low %v1598_v1, %v1690_v12  ;;  %v1713_v15 = vcombine.high %v1598_v1, %v1690_v12  ;;  %v2577_v1 = vld [vmem:[%s2911_s21] sm:$0xff]  ;;  %v2543_v11 = vld [vmem:[#allocation4 + $0x8] sm:$0xff]  }
 0x59d   : > { %v2403_v16 = vpop.f32.mrf.mxu1  ;;  %v2408_v17 = vpop.f32.mrf.mxu0  ;;  %2419 = vmatpush3.bf16.msra.mxu0 %v2543_v11  ;;  %v2544_v12 = vld [vmem:[#allocation4] sm:$0xff]  }
 0x59e   : > { %v1720_v20 = vrot.slane %v1712_v14, %v2970_v58  ;;  %v1727_v21 = vrot.slane %v1713_v15, %v2970_v58  ;;  %2420 = vmatprep.subr.bf16.mxu0 %v2720_v13 }
 0x59f   : > { %v1693_v22 = vpop.f32.mrf.mxu0 }
 0x5a0   : > { %v1728_v23 = vcombine.low %v1704_v18, %v1720_v20  ;;  %v1729_v24 = vcombine.high %v1704_v18, %v1720_v20  ;;  %v1744_v25 = vcombine.low %v1711_v19, %v1727_v21  ;;  %v1745_v26 = vcombine.high %v1711_v19, %v1727_v21  ;;  %v2277_v18 = vld [vmem:[%s3252_s8] ss:$0 sm:$0xff] }
 0x5a1   : > { %v2409_v28 = vpop.f32.mrf.mxu0  ;;  %2421 = vmatpush3.bf16.msra.mxu0 %v2544_v12  ;;  %v2278_v20 = vld [vmem:[%s3253_s9] ss:$0 sm:$0xff] }
 0x5a2   : > { %v1736_v29 = vrot.slane %v1728_v23, %v2972_v61  ;;  %v1743_v30 = vrot.slane %v1729_v24, %v2972_v61  ;;  %v1752_v31 = vrot.slane %v1744_v25, %v2972_v61  ;;  %v1759_v32 = vrot.slane %v1745_v26, %v2972_v61  ;;  %v2545_v24 = vld [vmem:[%s3256_s12 + $0x38] sm:$0xff]   ;;  %v2546_v25 = vld [vmem:[%s3256_s12 + $0x30] sm:$0xff]   ;;  %v2547_v26 = vld [vmem:[%s3256_s12 + $0x28] sm:$0xff]  }
 0x5a3   : > { %v2549_v28 = vld [vmem:[%s3256_s12 + $0x18] sm:$0xff]  }
 0x5a4   : > { %v1764_v42 = vcombine.low %v1736_v29, %v1743_v30  ;;  %v2271_v33 = vcombine.high %v1736_v29, %v1743_v30  ;;  %v1780_v34 = vcombine.low %v1752_v31, %v1759_v32  ;;  %v2272_v35 = vcombine.high %v1752_v31, %v1759_v32  ;;  %v2550_v29 = vld [vmem:[%s3256_s12 + $0x10] sm:$0xff]   ;;  %v2551_v30 = vld [vmem:[%s3256_s12 + $0x8] sm:$0xff]   ;;  %v2552_v31 = vld [vmem:[%s3256_s12] sm:$0xff]  }
 0x5a5   : > { %v2279_v32 = vld [vmem:[#allocation7] ss:$0 sm:$0xff] }
 0x5a6   : > { %v1771_v10 = vrot.slane %v1764_v42, %v2970_v58  ;;  %v1779_v38 = vrot.slane %v2271_v33, %v2970_v58  ;;  %v1787_v39 = vrot.slane %v1780_v34, %v2970_v58  ;;  %v1795_v40 = vrot.slane %v2272_v35, %v2970_v58 }
 0x5a8   : > { %v1797_v41 = vcombine.high %v1771_v10, %v1779_v38  ;;  %v1813_v43 = vcombine.high %v1787_v39, %v1795_v40  ;;  %v1796_v44 = vcombine.low %v1771_v10, %v1779_v38  ;;  %v1812_v46 = vcombine.low %v1787_v39, %v1795_v40 }
 0x5aa   : > { %v1811_v48 = vrot.slane %v1797_v41, %v2972_v61  ;;  %v1827_v49 = vrot.slane %v1813_v43, %v2972_v61  ;;  %v1804_v50 = vrot.slane %v1796_v44, %v2972_v61  ;;  %v1820_v51 = vrot.slane %v1812_v46, %v2972_v61 }
 0x5ac   : > { %v1830_v52 = vcombine.low %v1811_v48, %v1827_v49  ;;  %v1829_v53 = vcombine.high %v1804_v50, %v1820_v51  ;;  %v1828_v47 = vcombine.low %v1804_v50, %v1820_v51  ;;  %v1831_v58 = vcombine.high %v1811_v48, %v1827_v49  ;;  %v2283_v49 = vld [vmem:[%s3257_s13] ss:$0 sm:$0xff] }
 0x5ae   : > { %1837 = vrot.lane.b32.xlu0 %v1830_v52, %s2728_s18  ;;  %1833 = vrot.lane.b32.xlu1 %v1829_v53, %s2729_s25  ;;  %s2252_s18 = sshll.u32 %s498_s17, 3 }
 0x5af   : > { %s500_s28 = scalar_lea.vmem [#allocation9], %s2252_s18  ;;  %s2636_s18 = scalar_lea.vmem %s2635_s15, 256 }
 0x5b0   : > { %s2151_s21 = sshll.u32 %s500_s28, 4  ;;  %s3199_s21 = int_to_ptr.vmem [resolvable:$true] %s2151_s21 }
 0x5b1   : > { %s2630_s19 = scalar_lea.vmem %s3199_s21, 128  ;;  %p2637_p0 = scmp.lt.s32.totalorder %s3199_s21, %s2635_s15 }
 0x5b2   : > { %1841 = vrot.lane.b32.xlu1 %v1831_v58, %s2730_s26  ;;  %p2631_p10 = scmp.ne.s32.totalorder %s3199_s21, %s2630_s19  ;;  %p2638_p7 = scmp.lt.s32.totalorder %s2636_s18, %s2630_s19 }
 0x5b4   : > { %p2632_p11 = pnand %p2631_p10, %p2847_p4  ;;  %p2639_p9 = por %p2638_p7, %p2637_p0 }
 0x5b6   : > { %p2633_p13 = pneg %p2632_p11 }
 0x5b8   : > { %p2640_p12 = pnand %p2639_p9, %p2633_p13 }
 0x620   : > { %v1834_v54 = vpop.permute.xlu1 %1833  ;;  %v1838_v55 = vpop.permute.xlu0 %1837 }
 0x621   : > { %v1844_v37 = vsel %vm1278_vm3, %v1828_v47, %v1834_v54 }
 0x622   : > { %v1846_v56 = vsel %vm1845_vm5, %v1844_v37, %v1838_v55 }
 0x624   : > { %v1842_v45 = vpop.permute.xlu1 %1841 }
 0x625   : > { %v1848_v61 = vsel %vm1847_vm6, %v1846_v56, %v1842_v45 }
 0x626   : > { %v1849_v57 = vpack.c.bf16 %v1848_v61, %v1848_v61 }
 0x628   : > { %2415 = vmatmul.mubr.msk.bf16.vlgmr.msra.gmra.mxu1 %vm513_vm0, %v1849_v57 }
 0x629   : > { %2442 = vmatprep.mubr.msk.bf16.mxu1 %vm2721_vm1, %v2720_v13  ;;  %2427 = vmatpush3.bf16.msra.mxu1 %v2545_v24 }
 0x62a   : > { %2428 = vmatprep.subr.bf16.mxu1 %v2720_v13 }
 0x62d   : > { %2429 = vmatpush3.bf16.msra.mxu1 %v2546_v25 }
 0x62e   : > { %2430 = vmatprep.subr.bf16.mxu1 %v2720_v13 }
 0x631   : > { %2431 = vmatpush3.bf16.msra.mxu1 %v2547_v26 }
 0x632   : > { %2432 = vmatprep.subr.bf16.mxu1 %v2720_v13 }
 0x635   : > { %2433 = vmatpush3.bf16.msra.mxu1 %v2548_v27 }
 0x636   : > { %2434 = vmatprep.subr.bf16.mxu1 %v2720_v13 }
 0x639   : > { %2435 = vmatpush3.bf16.msra.mxu1 %v2549_v28 }
 0x63a   : > { %2436 = vmatprep.subr.bf16.mxu1 %v2720_v13 }
 0x63d   : > { %2437 = vmatpush3.bf16.msra.mxu1 %v2550_v29 }
 0x63e   : > { %2438 = vmatprep.subr.bf16.mxu1 %v2720_v13 }
 0x641   : > { %2439 = vmatpush3.bf16.msra.mxu1 %v2551_v30 }
 0x642   : > { %2440 = vmatprep.subr.bf16.mxu1 %v2720_v13 }
 0x645   : > { %2441 = vmatpush3.bf16.msra.mxu1 %v2552_v31 }
 0x6e8   : > { %v1910_v62 = vpop.f32.mrf.mxu1 }
 0x6e9   : > { %v1911_v63 = vadd.f32 %v2273_v59, %v1910_v62 }
 0x6ea   : > { %v2416_v0 = vpop.f32.mrf.mxu1 }
 0x6eb   : > { %v3143_v2 = vadd.f32 %v2577_v1, %v1911_v63 }
 0x6ec   : > { %v1913_v60 = vpop.f32.mrf.mxu1 }
 0x6ed   : > { %v1919_v3 = vsel %vm513_vm0, %v3143_v2, 0.0 }
 0x6ee   : > { %1920 = vadd.xlane.f32.xlu1 %v1919_v3  ;;  %v2417_v4 = vpop.f32.mrf.mxu1 }
 0x777   : > { %v1921_v5 = vpop.xlane.xlu1 %1920 }
 0x778   : > { %v1922_v6 = vmul.f32 0.03125, %v1921_v5 }
 0x77a   : > { %v1923_v7 = vsub.f32 %v3143_v2, %v1922_v6 }
 0x77c   : > { %v1924_v8 = vmul.f32 %v1923_v7, %v1923_v7 }
 0x77e   : > { %v1925_v9 = vsel %vm513_vm0, %v1924_v8, 0.0 }
 0x77f   : > { %1926 = vadd.xlane.f32.xlu0 %v1925_v9 }
 0x808   : > { %v1927_v14 = vpop.xlane.xlu0 %1926 }
 0x809   : > { %v1928_v15 = vmul.f32 0.03125, %v1927_v14 }
 0x80b   : > { %v1929_v16 = vadd.f32 1e-05, %v1928_v15 }
 0x80d   : > { %2573 = vrsqrt.f32 %v1929_v16 }
 0x81a   : > { %v2574_v17 = vpop.eup %2573 }
 0x81b   : > { %v1931_v19 = vmul.f32 %v2574_v17, %v1923_v7 }
 0x81d   : > { %v1938_v21 = vmul.f32 %v2277_v18, %v1931_v19 }
 0x81f   : > { %v1945_v22 = vadd.f32 %v2278_v20, %v1938_v21 }
 0x821   : > { %v1946_v23 = vpack.c.bf16 %v1945_v22, %v1945_v22 }
 0x823   : > { %2423 = vmatmul.mubr.msk.bf16.vlgmr.msra.gmra.mxu0 %vm513_vm0, %v1946_v23 }
 0x8e3   : > { %v2007_v42 = vpop.f32.mrf.mxu0 }
 0x8e4   : > { %v2008_v33 = vadd.f32 %v2279_v32, %v2007_v42 }
 0x8e5   : > { %v2424_v34 = vpop.f32.mrf.mxu0 }
 0x8e6   : > { %v2014_v35 = vmul.f32 %v2008_v33, %v2008_v33  ;;  %v2013_v44 = vmul.f32 0.5, %v2008_v33 }
 0x8e7   : > { %v2010_v36 = vpop.f32.mrf.mxu0 }
 0x8e8   : > { %v2015_v10 = vmul.f32 %v2014_v35, %v2008_v33 }
 0x8e9   : > { %v2425_v38 = vpop.f32.mrf.mxu0 }
 0x8ea   : > { %v2016_v39 = vmul.f32 0.044715, %v2015_v10 }
 0x8ec   : > { %v2017_v40 = vadd.f32 %v2016_v39, %v2008_v33 }
 0x8ee   : > { %v2018_v41 = vmul.f32 0.7978846, %v2017_v40 }
 0x8f0   : > { %2575 = vtanh.f32 %v2018_v41 }
 0x8fd   : > { %v2576_v43 = vpop.eup %2575 }
 0x8fe   : > { %v2020_v46 = vadd.f32 1.0, %v2576_v43 }
 0x900   : > { %v2021_v48 = vmul.f32 %v2020_v46, %v2013_v44 }
 0x902   : > { %v2022_v13 = vpack.c.bf16 %v2021_v48, %v2021_v48 }
 0x904   : > { %2443 = vmatmul.mubr.bf16.vlgmr.msra.gmra.mxu1 %v2022_v13 }
 0x9c4   : > { %v2128_v50 = vpop.f32.mrf.mxu1 }
 0x9c5   : > { %v2129_v51 = vadd.f32 %v2283_v49, %v2128_v50 }
 0x9c6   : > { %v2444_v52 = vpop.f32.mrf.mxu1 }
 0x9c7   : > { %v2134_v53 = vadd.f32 %v2129_v51, %v3143_v2 }
 0x9c8   : > { %v2131_v47 = vpop.f32.mrf.mxu1 }
 0x9c9   : > { %2135 = vst.msk [vmem:[%s500_s28] sm:$0xff] %vm513_vm0, %v2134_v53 }
 0x9ca   : > { %v2445_v58 = vpop.f32.mrf.mxu1 }
 0x9cb   : > { %2643 = shalt.err (!%p2640_p12)
}
 0x9cc   : > { %s2644_s25 = scalar_lea.hbm %s3197_s22, 128  ;;  %s2648_s27 = scalar_lea.hbm %s3258_s14, 256 }
 0x9cd   : > { %p2645_p1 = scmp.ne.s32.totalorder %s3197_s22, %s2644_s25  ;;  %p2649_p3 = scmp.lt.s32.totalorder %s3197_s22, %s3258_s14 }
 0x9ce   : > { %p2650_p6 = scmp.lt.s32.totalorder %s2648_s27, %s2644_s25 }
 0x9cf   : > { %p2646_p2 = pnand %p2645_p1, %p2847_p4 }
 0x9d0   : > { %p2651_p8 = por %p2650_p6, %p2649_p3 }
 0x9d1   : > { %p2647_p5 = pneg %p2646_p2 }
 0x9d3   : > { %p2652_p10 = pnand %p2651_p8, %p2647_p5 }
 0x9d5   : > { %2655 = shalt.err (!%p2652_p10)
}
 0x9d6   : > { %2454 = dma.vmem_to_hbm [thread:$0]  (%p2847_p4), %s3199_s21, 128, %s3197_s22, %s2137_s16  }
 0x9d7 PF: > { %s3278_s20 = sld [smem:[#allocation16_spill]] }
 0x9d8   : > { %s3279_s19 = sld [smem:[#allocation13_spill]] }
 0x9d9   : > { %s3280_s29 = sld [smem:[#allocation18_spill]] }
 0x9dd   : > { %p2471_p11 = scmp.ge.s32.totalorder %s3278_s20, 2 }
 0x9de   : > { %s2163_s15 = sand.u32 1, %s3279_s19  }
 0x9df   : > { %p3281_p13 = scmp.ne.s32.totalorder %s3280_s29, 0  ;;  %s2164_s18 = scalar_lea.sflag [#allocation6], %s2163_s15 }
 0x9e1   : > { %p2464_p0 = pnand %p2471_p11, %p3281_p13 }
 0x9e3   : > { %p2465_p7 = pneg %p2464_p0 }
 0x9e5   : > { %2689 = dma.done.wait (%p2465_p7), %s2164_s18, 128  }
 0x9e6   : > { %2691 = vsyncadd (%p2465_p7), %s2164_s18, 4294967168  ;;  %s29_s18 = sadd.s32 1, %s3278_s20   ;;  %s3282_s23 = sld [smem:[#allocation14_spill]] }
 0x9e7   : > { %p26_p9 = scmp.ge.s32.totalorder %s29_s18, 4   ;;  %s3283_s15 = sld [smem:[#allocation19_spill]] }
 0x9e8   : > { %s3284_s16 = sld [smem:[#allocation15_spill]]  ;;  %s3286_s29 = smov %s2698_s30 }
 0x9e9   : > { %s3285_s17 = sld [smem:[#allocation17_spill]]  ;;  %28 = sbr.rel (!%p26_p9) target bundleno = 6 (0x6), region = 125 }
 0x9ec   : > { %s3287_s30 = smov %s3282_s23 }
 0x9ee   :  { %2169 = vsyncpa [#allocation5], 1 }
 0x9ef   :  { %2171 = vsyncpa [#allocation5 + $0x1], 1 }
 0x9f0   :  { %2172 = vsyncpa [#allocation8], 1 }
 0x9f1   :  { %2173 = vsyncpa [#allocation6], 1 }
 0x9f2   :  { %2175 = vsyncpa [#allocation6 + $0x1], 1 }

</bundles_post_ra>
